<compile_context>
chip_gen: v7x
topology: tpu7x:2x2x1
jax: 0.10.0
libtpu: 0.0.40
codegen_flags: <defaults>
</compile_context>

<pallas_src>
import math

import jax
import jax.numpy as jnp
from jax import lax
from jax.experimental import pallas as pl
from jax.experimental.pallas import tpu as pltpu


# ---------------------------------------------------------------------------
# host-side helpers
# ---------------------------------------------------------------------------
def _round_up(n, m):
    return (n + m - 1) // m * m


def _nbytes(shape, dtype):
    return math.prod(int(d) for d in shape) * jnp.dtype(dtype).itemsize


def _buf_bytes(shape, dtype):
    """VMEM footprint of one buffer with dtype-correct (sublane, lane) tiling."""
    itemsize = jnp.dtype(dtype).itemsize
    s = (1, 1) + tuple(int(d) for d in shape)
    lanes = _round_up(s[-1], 128)
    sub_tile = 8 * max(4 // itemsize, 1)          # f32 -> 8, bf16 -> 16
    sublanes = _round_up(s[-2], sub_tile)
    outer = math.prod(s[:-2])
    return outer * sublanes * lanes * itemsize


def _vmem_cap_bytes():
    """~75% of physical VMEM (v5e/v6e 128 MiB, v7x 64 MiB); safe fallback."""
    try:
        phys = int(pltpu.get_tpu_info().vmem_capacity_bytes)
    except Exception:
        phys = 64 << 20
    return int(phys * 3 // 4)


def _vmem_limit(bufs, pipelined=False):
    total = sum(_buf_bytes(s, d) for s, d in bufs)
    mult = 2 if pipelined else 1                  # double-buffered blocks
    return int(min(max(mult * total + (4 << 20), 32 << 20), _vmem_cap_bytes()))


# ---------------------------------------------------------------------------
# Kernel 1: fused [Conv1d(k=3,p=1) + BatchNorm1d(train) + ReLU] x 2,
#           chunked over T inside the kernel (bounded f32 intermediates).
# ---------------------------------------------------------------------------
def _make_conv_kernel(T, TT):
    def kernel(xh_ref, w1_ref, b1_ref, g1_ref, bt1_ref,
               w2_ref, b2_ref, g2_ref, bt2_ref,
               out_ref, x2_ref):
        # xh_ref : (Tp+2, B, C) bf16; row 0 and rows >= T+1 are zero (halo/tail)
        # w*_ref : (3, C, C) bf16, w[k, ci, co]
        # b/g/bt : (1, C)    f32   conv bias / BN gamma / BN beta
        # out_ref: (Tp, B, C) bf16; x2_ref: (Tp+2, B, C) bf16 scratch
        Tp2, B, C = xh_ref.shape
        Tp = Tp2 - 2
        n_chunks = Tp // TT
        inv_n = 1.0 / float(T * B)

        def layer(src, dst, off, w_ref, b_ref, g_ref, bt_ref):
            # pass A: conv as 3 accumulated per-tap matmuls; store raw (bf16),
            #         accumulate BN moments in f32 over the T*B valid rows.
            wk0 = w_ref[0]
            wk1 = w_ref[1]
            wk2 = w_ref[2]
            b = b_ref[...]
            s1 = jnp.zeros((1, C), jnp.float32)
            s2 = jnp.zeros((1, C), jnp.float32)
            for c in range(n_chunks):
                t0 = c * TT
                xa = src[t0: t0 + TT].reshape(TT * B, C)          # x[t-1]
                xb = src[t0 + 1: t0 + TT + 1].reshape(TT * B, C)  # x[t]
                xc = src[t0 + 2: t0 + TT + 2].reshape(TT * B, C)  # x[t+1]
                acc = (jnp.dot(xa, wk0, preferred_element_type=jnp.float32)
                       + jnp.dot(xb, wk1, preferred_element_type=jnp.float32)
                       + jnp.dot(xc, wk2, preferred_element_type=jnp.float32)
                       + b)
                v = max(min(T - t0, TT), 0)        # static #valid time rows
                if v > 0:
                    av = acc[:v * B]
                    s1 = s1 + jnp.sum(av, axis=0, keepdims=True)
                    s2 = s2 + jnp.sum(av * av, axis=0, keepdims=True)
                dst[t0 + off: t0 + off + TT] = acc.reshape(TT, B, C).astype(dst.dtype)

            # BN affine from the accumulated moments (training-mode stats).
            # NOTE: E[x^2]-E[x]^2 in f32; fine at these magnitudes (review note).
            mean = s1 * inv_n
            var = jnp.maximum(s2 * inv_n - mean * mean, 0.0)
            scale = g_ref[...] * lax.rsqrt(var + 1e-5)
            shift = bt_ref[...] - mean * scale

            # pass B: in-place BN + ReLU (dropout p=0 -> identity)
            for c in range(n_chunks):
                t0 = c * TT
                raw = dst[t0 + off: t0 + off + TT].astype(jnp.float32)
                raw = raw.reshape(TT * B, C)
                y = jnp.maximum(raw * scale + shift, 0.0)
                dst[t0 + off: t0 + off + TT] = y.reshape(TT, B, C).astype(dst.dtype)

            # zero the padded tail so the next stage's k=+1 tap sees zeros
            if T < Tp:
                dst[T + off: Tp + off] = jnp.zeros((Tp - T, B, C), dst.dtype)

        # stage 1: conv1 + BN1 + ReLU -> interior rows of x2_ref (halo layout)
        layer(xh_ref, x2_ref, 1, w1_ref, b1_ref, g1_ref, bt1_ref)
        x2_ref[0:1] = jnp.zeros((1, B, C), x2_ref.dtype)              # leading halo
        x2_ref[Tp + 1: Tp + 2] = jnp.zeros((1, B, C), x2_ref.dtype)   # trailing halo
        # stage 2: conv2 + BN2 + ReLU -> out_ref (stage-1 never leaves VMEM)
        layer(x2_ref, out_ref, 0, w2_ref, b2_ref, g2_ref, bt2_ref)

    return kernel


def conv_stack(xh, prep, T, TT):
    """xh: (Tp+2, B, Ep) bf16 time-major w/ zero halo. Returns (Tp, B, Ep) bf16."""
    Tp2, B, Ep = xh.shape
    Tp = Tp2 - 2
    args = (xh, prep["w1"], prep["b1"], prep["g1"], prep["bt1"],
            prep["w2"], prep["b2"], prep["g2"], prep["bt2"])
    out_sds = jax.ShapeDtypeStruct((Tp, B, Ep), jnp.bfloat16)
    scratch = ((Tp2, B, Ep), jnp.bfloat16)

    bufs = [(a.shape, a.dtype) for a in args] + \
           [(out_sds.shape, out_sds.dtype), scratch] + \
           [((TT * B, Ep), jnp.float32)] * 6            # chunk temporaries
    flops = 2 * 2 * Tp * B * 3 * Ep * Ep
    hbm = sum(_nbytes(a.shape, a.dtype) for a in args) + \
        _nbytes(out_sds.shape, out_sds.dtype)

    vmem = pl.BlockSpec(memory_space=pltpu.MemorySpace.VMEM)
    return pl.pallas_call(
        _make_conv_kernel(T, TT),
        out_shape=out_sds,
        in_specs=[vmem] * len(args),
        out_specs=vmem,
        scratch_shapes=[pltpu.VMEM(*scratch)],
        compiler_params=pltpu.CompilerParams(vmem_limit_bytes=_vmem_limit(bufs)),
        cost_estimate=pl.CostEstimate(flops=int(flops),
                                      transcendentals=int(2 * Ep),
                                      bytes_accessed=int(hbm)),
    )(*args)


# ---------------------------------------------------------------------------
# Kernel 2: hoisted GRU input projection, tiled over T ("parallel" grid so it
#           can use both TensorCores on v7x), gi streamed to HBM in bf16.
# ---------------------------------------------------------------------------
def _gi_kernel(y_ref, wi_ref, bi_ref, gif_ref, gib_ref):
    TT, B, Ep = y_ref.shape
    H3 = gif_ref.shape[-1]
    g = jnp.dot(y_ref[...].reshape(TT * B, Ep), wi_ref[...],
                preferred_element_type=jnp.float32) + bi_ref[...]
    g = g.reshape(TT, B, 2 * H3)
    gif_ref[...] = g[:, :, :H3].astype(gif_ref.dtype)
    gib_ref[...] = g[:, :, H3:].astype(gib_ref.dtype)


def gru_input_proj(y, prep, TT):
    Tp, B, Ep = y.shape
    Hp = prep["Hp"]
    Tc = Tp // TT
    in_specs = [
        pl.BlockSpec((TT, B, Ep), lambda i: (i, 0, 0)),
        pl.BlockSpec((Ep, 6 * Hp), lambda i: (0, 0)),
        pl.BlockSpec((1, 6 * Hp), lambda i: (0, 0)),
    ]
    out_specs = (
        pl.BlockSpec((TT, B, 3 * Hp), lambda i: (i, 0, 0)),
        pl.BlockSpec((TT, B, 3 * Hp), lambda i: (i, 0, 0)),
    )
    out_sds = (jax.ShapeDtypeStruct((Tp, B, 3 * Hp), jnp.bfloat16),
               jax.ShapeDtypeStruct((Tp, B, 3 * Hp), jnp.bfloat16))
    bufs = [((TT, B, Ep), jnp.bfloat16), ((Ep, 6 * Hp), jnp.bfloat16),
            ((1, 6 * Hp), jnp.float32),
            ((TT, B, 3 * Hp), jnp.bfloat16), ((TT, B, 3 * Hp), jnp.bfloat16),
            ((TT * B, 6 * Hp), jnp.float32)]
    flops = 2 * Tp * B * Ep * 6 * Hp
    hbm = _nbytes(y.shape, y.dtype) + _nbytes((Ep, 6 * Hp), jnp.bfloat16) + \
        2 * _nbytes((Tp, B, 3 * Hp), jnp.bfloat16)
    return pl.pallas_call(
        _gi_kernel,
        grid=(Tc,),
        out_shape=out_sds,
        in_specs=in_specs,
        out_specs=out_specs,
        compiler_params=pltpu.CompilerParams(
            dimension_semantics=("parallel",),
            vmem_limit_bytes=_vmem_limit(bufs, pipelined=True)),
        cost_estimate=pl.CostEstimate(flops=int(flops), transcendentals=0,
                                      bytes_accessed=int(hbm)),
    )(y, prep["wi"], prep["bi"])


# ---------------------------------------------------------------------------
# Kernel 3: masked bidirectional GRU recurrence, fused directions, streamed
#           gi / output blocks, carries held in resident output refs.
# ---------------------------------------------------------------------------
def _make_bigru_kernel(TT, Tc, Hp):
    def kernel(lens_ref, gif_ref, gib_ref, whf_ref, bhf_ref, whb_ref, bhb_ref,
               outf_ref, outb_ref, hf_ref, hb_ref):
        # lens_ref : (B, 1)       int32
        # gif/gib  : (TT, B, 3Hp) bf16 blocks (fwd / time-reversed bwd order)
        # wh*/bh*  : (Hp, 3Hp) bf16 / (1, 3Hp) f32
        # outf/outb: (TT, B, Hp)  bf16 blocks
        # hf/hb    : (B, Hp)      f32  resident carries (constant index_map)
        i = pl.program_id(0)

        @pl.when(i == 0)
        def _():
            hf_ref[...] = jnp.zeros_like(hf_ref)
            hb_ref[...] = jnp.zeros_like(hb_ref)

        lens = lens_ref[...]                       # hoisted, loop-invariant
        whf = whf_ref[...]
        bhf = bhf_ref[...]
        whb = whb_ref[...]
        bhb = bhb_ref[...]
        hf = hf_ref[...]
        hb = hb_ref[...]
        t0f = i * TT
        t0b = (Tc - 1 - i) * TT

        def cell(gi_t, h, wh, bh):
            gh = jnp.dot(h.astype(wh.dtype), wh,
                         preferred_element_type=jnp.float32) + bh
            r = jax.nn.sigmoid(gi_t[:, 0 * Hp:1 * Hp] + gh[:, 0 * Hp:1 * Hp])
            z = jax.nn.sigmoid(gi_t[:, 1 * Hp:2 * Hp] + gh[:, 1 * Hp:2 * Hp])
            n = jnp.tanh(gi_t[:, 2 * Hp:3 * Hp] + r * gh[:, 2 * Hp:3 * Hp])
            return (1.0 - z) * n + z * h

        # fully-unrolled fused fwd(t) / bwd(T-1-t) recurrence over the block
        for tau in range(TT):
            tf = t0f + tau
            tb = t0b + (TT - 1 - tau)
            mf = (lens > tf).astype(jnp.float32)   # (B, 1)
            mb = (lens > tb).astype(jnp.float32)
            gif = gif_ref[tau].astype(jnp.float32)
            gib = gib_ref[TT - 1 - tau].astype(jnp.float32)
            hf_c = cell(gif, hf, whf, bhf)
            hb_c = cell(gib, hb, whb, bhb)
            hf = hf + mf * (hf_c - hf)             # freeze past len (packed sem.)
            hb = hb + mb * (hb_c - hb)
            outf_ref[tau] = (mf * hf).astype(outf_ref.dtype)
            outb_ref[TT - 1 - tau] = (mb * hb).astype(outb_ref.dtype)

        hf_ref[...] = hf
        hb_ref[...] = hb

    return kernel


def bigru(gi_f, gi_b, lens_col, prep, TT):
    Tp, B, H3 = gi_f.shape
    Hp = H3 // 3
    Tc = Tp // TT
    in_specs = [
        pl.BlockSpec((B, 1), lambda i: (0, 0)),
        pl.BlockSpec((TT, B, 3 * Hp), lambda i: (i, 0, 0)),
        pl.BlockSpec((TT, B, 3 * Hp), lambda i: (Tc - 1 - i, 0, 0)),
        pl.BlockSpec((Hp, 3 * Hp), lambda i: (0, 0)),
        pl.BlockSpec((1, 3 * Hp), lambda i: (0, 0)),
        pl.BlockSpec((Hp, 3 * Hp), lambda i: (0, 0)),
        pl.BlockSpec((1, 3 * Hp), lambda i: (0, 0)),
    ]
    out_specs = (
        pl.BlockSpec((TT, B, Hp), lambda i: (i, 0, 0)),
        pl.BlockSpec((TT, B, Hp), lambda i: (Tc - 1 - i, 0, 0)),
        pl.BlockSpec((B, Hp), lambda i: (0, 0)),
        pl.BlockSpec((B, Hp), lambda i: (0, 0)),
    )
    out_sds = (jax.ShapeDtypeStruct((Tp, B, Hp), jnp.bfloat16),
               jax.ShapeDtypeStruct((Tp, B, Hp), jnp.bfloat16),
               jax.ShapeDtypeStruct((B, Hp), jnp.float32),
               jax.ShapeDtypeStruct((B, Hp), jnp.float32))
    bufs = [((B, 1), jnp.int32),
            ((TT, B, 3 * Hp), jnp.bfloat16), ((TT, B, 3 * Hp), jnp.bfloat16),
            ((Hp, 3 * Hp), jnp.bfloat16), ((1, 3 * Hp), jnp.float32),
            ((Hp, 3 * Hp), jnp.bfloat16), ((1, 3 * Hp), jnp.float32),
            ((TT, B, Hp), jnp.bfloat16), ((TT, B, Hp), jnp.bfloat16),
            ((B, Hp), jnp.float32), ((B, Hp), jnp.float32)]
    flops = Tp * 2 * 2 * B * Hp * 3 * Hp
    transcend = Tp * 2 * 3 * B * Hp
    hbm = 2 * _nbytes((Tp, B, 3 * Hp), jnp.bfloat16) + \
        2 * _nbytes((Tp, B, Hp), jnp.bfloat16) + \
        2 * _nbytes((Hp, 3 * Hp), jnp.bfloat16)
    # TODO(synk): on v7x, split the two directions across the 2 TensorCores via
    # a leading size-2 "parallel" grid axis (kept fused here: best for 1-TC chips).
    return pl.pallas_call(
        _make_bigru_kernel(TT, Tc, Hp),
        grid=(Tc,),
        out_shape=out_sds,
        in_specs=in_specs,
        out_specs=out_specs,
        compiler_params=pltpu.CompilerParams(
            dimension_semantics=("arbitrary",),
            vmem_limit_bytes=_vmem_limit(bufs, pipelined=True)),
        cost_estimate=pl.CostEstimate(flops=int(flops),
                                      transcendentals=int(transcend),
                                      bytes_accessed=int(hbm)),
    )(lens_col, gi_f, gi_b, prep["whf"], prep["bhf"], prep["whb"], prep["bhb"])


# ---------------------------------------------------------------------------
# parameter preparation (once, outside the hot path)
# ---------------------------------------------------------------------------
def prepare_encoder_params(raw, embedding_dim, hidden_size):
    E, H = embedding_dim, hidden_size
    Ep, Hp = _round_up(E, 128), _round_up(H, 128)

    def pad_last(x, tgt):
        return jnp.pad(x, [(0, 0)] * (x.ndim - 1) + [(0, tgt - x.shape[-1])])

    def pad_gru_gates(w, rows, rows_p):          # (rows, 3H) -> (rows_p, 3Hp)
        blocks = [w[:, i * H:(i + 1) * H] for i in range(3)]
        blocks = [jnp.pad(b, ((0, rows_p - rows), (0, Hp - H))) for b in blocks]
        return jnp.concatenate(blocks, axis=1)

    p = {"E": E, "H": H, "Ep": Ep, "Hp": Hp}
    V = raw["embedding"].shape[0]
    emb = pad_last(raw["embedding"], Ep)
    # append one zero row used as the conv halo / time-padding source
    p["emb"] = jnp.concatenate([emb, jnp.zeros((1, Ep), emb.dtype)],
                               axis=0).astype(jnp.bfloat16)
    p["zero_idx"] = V

    p["w1"] = jnp.pad(raw["w1"], ((0, 0), (0, Ep - E), (0, Ep - E))).astype(jnp.bfloat16)
    p["w2"] = jnp.pad(raw["w2"], ((0, 0), (0, Ep - E), (0, Ep - E))).astype(jnp.bfloat16)
    for src, dst in (("b1", "b1"), ("g1", "g1"), ("beta1", "bt1"),
                     ("b2", "b2"), ("g2", "g2"), ("beta2", "bt2")):
        p[dst] = pad_last(raw[src], Ep).astype(jnp.float32)

    wif = pad_gru_gates(raw["wif"], E, Ep)
    wib = pad_gru_gates(raw["wib"], E, Ep)
    p["wi"] = jnp.concatenate([wif, wib], axis=1).astype(jnp.bfloat16)   # (Ep, 6Hp)
    bif = pad_gru_gates(raw["bif"], 1, 1)
    bib = pad_gru_gates(raw["bib"], 1, 1)
    p["bi"] = jnp.concatenate([bif, bib], axis=1).astype(jnp.float32)    # (1, 6Hp)
    p["whf"] = pad_gru_gates(raw["whf"], H, Hp).astype(jnp.bfloat16)     # (Hp, 3Hp)
    p["whb"] = pad_gru_gates(raw["whb"], H, Hp).astype(jnp.bfloat16)
    p["bhf"] = pad_gru_gates(raw["bhf"], 1, 1).astype(jnp.float32)       # (1, 3Hp)
    p["bhb"] = pad_gru_gates(raw["bhb"], 1, 1).astype(jnp.float32)
    return p


# ---------------------------------------------------------------------------
# Encoder forward (thin glue; hot paths are the three Pallas kernels)
# ---------------------------------------------------------------------------
def encoder_forward(prep, ids, text_seq_lens, time_block=16):
    # ids: (B, T) int32; text_seq_lens: (B,) int32, max length == T.
    H, Hp = prep["H"], prep["Hp"]
    B, T = ids.shape
    TT = max(1, int(time_block))
    Tp = _round_up(T, TT)

    # Embedding gather emitted directly as the (Tp+2, B, Ep) time-major,
    # conv-halo-padded activation in ONE pass (halo/tail rows index the zero
    # row appended to the table -> no separate jnp.pad HBM pass).
    # TODO(synk): move this gather into the conv kernel (scalar-prefetched ids
    # + row-gather) so it overlaps the conv matmuls.
    zero_idx = prep["zero_idx"]
    ids_tm = ids.T.astype(jnp.int32)                               # (T, B)
    pad_top = jnp.full((1, B), zero_idx, jnp.int32)
    pad_bot = jnp.full((Tp + 1 - T, B), zero_idx, jnp.int32)
    ids_halo = jnp.concatenate([pad_top, ids_tm, pad_bot], axis=0)  # (Tp+2, B)
    xh = jnp.take(prep["emb"], ids_halo, axis=0)                    # (Tp+2, B, Ep)

    y = conv_stack(xh, prep, T, TT)                                 # (Tp, B, Ep) bf16
    gi_f, gi_b = gru_input_proj(y, prep, TT)                        # (Tp, B, 3Hp) x2

    lens_col = text_seq_lens.astype(jnp.int32).reshape(-1, 1)
    out_f, out_b, h_f, h_b = bigru(gi_f, gi_b, lens_col, prep, TT)

    if Hp == H:                                    # already lane-exact -> no slice
        out = jnp.concatenate([out_f[:T], out_b[:T]], axis=-1)
    else:
        out = jnp.concatenate([out_f[:T, :, :H], out_b[:T, :, :H]], axis=-1)
    output = jnp.transpose(out, (1, 0, 2)).astype(jnp.float32)      # (B, T, 2H)
    hidden = jnp.stack([h_f[:, :H], h_b[:, :H]], axis=0)            # (2, B, H)
    return output, hidden


def init_params(key, vocab_size, embedding_dim, hidden_size):
    E, H = embedding_dim, hidden_size
    ks = jax.random.split(key, 13)
    scale = 0.1
    p = {}
    p["embedding"] = scale * jax.random.normal(ks[0], (vocab_size, E), jnp.float32)
    # conv weights stored as (K, Cin, Cout) = transpose of torch (Cout, Cin, K)
    p["w1"] = scale * jax.random.normal(ks[1], (3, E, E), jnp.float32)
    p["b1"] = scale * jax.random.normal(ks[2], (1, E), jnp.float32)
    p["g1"] = jnp.ones((1, E), jnp.float32)
    p["beta1"] = jnp.zeros((1, E), jnp.float32)
    p["w2"] = scale * jax.random.normal(ks[3], (3, E, E), jnp.float32)
    p["b2"] = scale * jax.random.normal(ks[4], (1, E), jnp.float32)
    p["g2"] = jnp.ones((1, E), jnp.float32)
    p["beta2"] = jnp.zeros((1, E), jnp.float32)
    # GRU weights stored transposed: (input_dim, 3H), gate order r|z|n
    p["wif"] = scale * jax.random.normal(ks[5], (E, 3 * H), jnp.float32)
    p["whf"] = scale * jax.random.normal(ks[6], (H, 3 * H), jnp.float32)
    p["bif"] = scale * jax.random.normal(ks[7], (1, 3 * H), jnp.float32)
    p["bhf"] = scale * jax.random.normal(ks[8], (1, 3 * H), jnp.float32)
    p["wib"] = scale * jax.random.normal(ks[9], (E, 3 * H), jnp.float32)
    p["whb"] = scale * jax.random.normal(ks[10], (H, 3 * H), jnp.float32)
    p["bib"] = scale * jax.random.normal(ks[11], (1, 3 * H), jnp.float32)
    p["bhb"] = scale * jax.random.normal(ks[12], (1, 3 * H), jnp.float32)
    return p


if __name__ == "__main__":
    vocab_size, embedding_dim, hidden_size = 20, 32, 32
    B, T = 2, 16

    key = jax.random.PRNGKey(0)
    k_ids, _ = jax.random.split(key)
    ids = jax.random.randint(k_ids, (B, T), 0, vocab_size, dtype=jnp.int32)
    # packed-sequence semantics: lengths sorted descending, max length == T
    text_seq_lens = jnp.array([T, T - 4], dtype=jnp.int32)

    raw = init_params(jax.random.PRNGKey(42), vocab_size, embedding_dim, hidden_size)
    prep = prepare_encoder_params(raw, embedding_dim, hidden_size)

    output, hidden = encoder_forward(prep, ids, text_seq_lens)
    jax.block_until_ready(output)
    jax.block_until_ready(hidden)

    assert output.shape == (B, T, 2 * hidden_size)
    assert hidden.shape == (2, B, hidden_size)
    print("KERNEL_OK")
</pallas_src>

<mosaic_0001>
module attributes {stable_mosaic.version = 11 : i64} {
  func.func @kernel(%arg0: memref<18x2x128xbf16, #tpu.memory_space<vmem>>, %arg1: memref<3x128x128xbf16, #tpu.memory_space<vmem>>, %arg2: memref<1x128xf32, #tpu.memory_space<vmem>>, %arg3: memref<1x128xf32, #tpu.memory_space<vmem>>, %arg4: memref<1x128xf32, #tpu.memory_space<vmem>>, %arg5: memref<3x128x128xbf16, #tpu.memory_space<vmem>>, %arg6: memref<1x128xf32, #tpu.memory_space<vmem>>, %arg7: memref<1x128xf32, #tpu.memory_space<vmem>>, %arg8: memref<1x128xf32, #tpu.memory_space<vmem>>, %arg9: memref<16x2x128xbf16, #tpu.memory_space<vmem>>, %arg10: memref<18x2x128xbf16, #tpu.memory_space<vmem>>) attributes {dimension_semantics = [], scalar_prefetch = 0 : i64, scratch_operands = 1 : i64, tpu.core_type = #tpu.core_type<tc>} {
    %c0 = arith.constant 0 : index
    %c0_0 = arith.constant 0 : index
    %c0_1 = arith.constant 0 : index
    %0 = vector.load %arg1[%c0, %c0_0, %c0_1] : memref<3x128x128xbf16, #tpu.memory_space<vmem>>, vector<1x128x128xbf16>
    %1 = vector.shape_cast %0 : vector<1x128x128xbf16> to vector<128x128xbf16>
    %c1 = arith.constant 1 : index
    %c0_2 = arith.constant 0 : index
    %c0_3 = arith.constant 0 : index
    %2 = vector.load %arg1[%c1, %c0_2, %c0_3] : memref<3x128x128xbf16, #tpu.memory_space<vmem>>, vector<1x128x128xbf16>
    %3 = vector.shape_cast %2 : vector<1x128x128xbf16> to vector<128x128xbf16>
    %c2 = arith.constant 2 : index
    %c0_4 = arith.constant 0 : index
    %c0_5 = arith.constant 0 : index
    %4 = vector.load %arg1[%c2, %c0_4, %c0_5] : memref<3x128x128xbf16, #tpu.memory_space<vmem>>, vector<1x128x128xbf16>
    %5 = vector.shape_cast %4 : vector<1x128x128xbf16> to vector<128x128xbf16>
    %c0_6 = arith.constant 0 : index
    %c0_7 = arith.constant 0 : index
    %6 = vector.load %arg2[%c0_6, %c0_7] : memref<1x128xf32, #tpu.memory_space<vmem>>, vector<1x128xf32>
    %cst = arith.constant 0.000000e+00 : f32
    %7 = vector.broadcast %cst : f32 to vector<1x128xf32>
    %cst_8 = arith.constant 0.000000e+00 : f32
    %8 = vector.broadcast %cst_8 : f32 to vector<1x128xf32>
    %c0_9 = arith.constant 0 : index
    %c0_10 = arith.constant 0 : index
    %c0_11 = arith.constant 0 : index
    %9 = vector.load %arg0[%c0_9, %c0_10, %c0_11] : memref<18x2x128xbf16, #tpu.memory_space<vmem>>, vector<16x2x128xbf16>
    %10 = vector.shape_cast %9 : vector<16x2x128xbf16> to vector<32x128xbf16>
    %c1_12 = arith.constant 1 : index
    %c0_13 = arith.constant 0 : index
    %c0_14 = arith.constant 0 : index
    %11 = vector.load %arg0[%c1_12, %c0_13, %c0_14] : memref<18x2x128xbf16, #tpu.memory_space<vmem>>, vector<16x2x128xbf16>
    %12 = vector.shape_cast %11 : vector<16x2x128xbf16> to vector<32x128xbf16>
    %c2_15 = arith.constant 2 : index
    %c0_16 = arith.constant 0 : index
    %c0_17 = arith.constant 0 : index
    %13 = vector.load %arg0[%c2_15, %c0_16, %c0_17] : memref<18x2x128xbf16, #tpu.memory_space<vmem>>, vector<16x2x128xbf16>
    %14 = vector.shape_cast %13 : vector<16x2x128xbf16> to vector<32x128xbf16>
    %cst_18 = arith.constant dense<0.000000e+00> : vector<32x128xf32>
    %15 = tpu.matmul %10, %1, %cst_18 {dimension_numbers = #tpu.dot_dimension_numbers<[1], [0], [0], [1], [0, 0, 1, 1], [], []>} : vector<32x128xbf16>, vector<128x128xbf16>, vector<32x128xf32> -> vector<32x128xf32>
    %cst_19 = arith.constant dense<0.000000e+00> : vector<32x128xf32>
    %16 = tpu.matmul %12, %3, %cst_19 {dimension_numbers = #tpu.dot_dimension_numbers<[1], [0], [0], [1], [0, 0, 1, 1], [], []>} : vector<32x128xbf16>, vector<128x128xbf16>, vector<32x128xf32> -> vector<32x128xf32>
    %17 = arith.addf %15, %16 : vector<32x128xf32>
    %cst_20 = arith.constant dense<0.000000e+00> : vector<32x128xf32>
    %18 = tpu.matmul %14, %5, %cst_20 {dimension_numbers = #tpu.dot_dimension_numbers<[1], [0], [0], [1], [0, 0, 1, 1], [], []>} : vector<32x128xbf16>, vector<128x128xbf16>, vector<32x128xf32> -> vector<32x128xf32>
    %19 = arith.addf %17, %18 : vector<32x128xf32>
    %20 = vector.broadcast %6 : vector<1x128xf32> to vector<32x128xf32>
    %21 = arith.addf %19, %20 : vector<32x128xf32>
    %cst_21 = arith.constant dense<0.000000e+00> : vector<128xf32>
    %22 = vector.multi_reduction <add>, %21, %cst_21 [0] : vector<32x128xf32> to vector<128xf32>
    %23 = vector.shape_cast %22 : vector<128xf32> to vector<1x128xf32>
    %24 = arith.addf %7, %23 : vector<1x128xf32>
    %25 = arith.mulf %21, %21 : vector<32x128xf32>
    %cst_22 = arith.constant dense<0.000000e+00> : vector<128xf32>
    %26 = vector.multi_reduction <add>, %25, %cst_22 [0] : vector<32x128xf32> to vector<128xf32>
    %27 = vector.shape_cast %26 : vector<128xf32> to vector<1x128xf32>
    %28 = arith.addf %8, %27 : vector<1x128xf32>
    %29 = vector.shape_cast %21 : vector<32x128xf32> to vector<16x2x128xf32>
    %30 = arith.truncf %29 : vector<16x2x128xf32> to vector<16x2x128xbf16>
    %c1_23 = arith.constant 1 : index
    %c0_24 = arith.constant 0 : index
    %c0_25 = arith.constant 0 : index
    %31 = vector.load %arg10[%c1_23, %c0_24, %c0_25] : memref<18x2x128xbf16, #tpu.memory_space<vmem>>, vector<16x2x128xbf16>
    tpu.vector_store %arg10[%c1_23, %c0_24, %c0_25], %30 {strides = array<i32>} : memref<18x2x128xbf16, #tpu.memory_space<vmem>>, vector<16x2x128xbf16>,
    %cst_26 = arith.constant 3.125000e-02 : f32
    %32 = vector.broadcast %cst_26 : f32 to vector<1x128xf32>
    %33 = arith.mulf %24, %32 : vector<1x128xf32>
    %cst_27 = arith.constant 3.125000e-02 : f32
    %34 = vector.broadcast %cst_27 : f32 to vector<1x128xf32>
    %35 = arith.mulf %28, %34 : vector<1x128xf32>
    %36 = arith.mulf %33, %33 : vector<1x128xf32>
    %37 = arith.subf %35, %36 : vector<1x128xf32>
    %cst_28 = arith.constant 0.000000e+00 : f32
    %38 = vector.broadcast %cst_28 : f32 to vector<1x128xf32>
    %39 = arith.maximumf %37, %38 : vector<1x128xf32>
    %c0_29 = arith.constant 0 : index
    %c0_30 = arith.constant 0 : index
    %40 = vector.load %arg3[%c0_29, %c0_30] : memref<1x128xf32, #tpu.memory_space<vmem>>, vector<1x128xf32>
    %cst_31 = arith.constant 9.99999974E-6 : f32
    %41 = vector.broadcast %cst_31 : f32 to vector<1x128xf32>
    %42 = arith.addf %39, %41 : vector<1x128xf32>
    %43 = math.rsqrt %42 : vector<1x128xf32>
    %44 = arith.mulf %40, %43 : vector<1x128xf32>
    %c0_32 = arith.constant 0 : index
    %c0_33 = arith.constant 0 : index
    %45 = vector.load %arg4[%c0_32, %c0_33] : memref<1x128xf32, #tpu.memory_space<vmem>>, vector<1x128xf32>
    %46 = arith.mulf %33, %44 : vector<1x128xf32>
    %47 = arith.subf %45, %46 : vector<1x128xf32>
    %c1_34 = arith.constant 1 : index
    %c0_35 = arith.constant 0 : index
    %c0_36 = arith.constant 0 : index
    %48 = vector.load %arg10[%c1_34, %c0_35, %c0_36] : memref<18x2x128xbf16, #tpu.memory_space<vmem>>, vector<16x2x128xbf16>
    %49 = arith.extf %48 : vector<16x2x128xbf16> to vector<16x2x128xf32>
    %50 = vector.shape_cast %49 : vector<16x2x128xf32> to vector<32x128xf32>
    %51 = vector.broadcast %44 : vector<1x128xf32> to vector<32x128xf32>
    %52 = arith.mulf %50, %51 : vector<32x128xf32>
    %53 = vector.broadcast %47 : vector<1x128xf32> to vector<32x128xf32>
    %54 = arith.addf %52, %53 : vector<32x128xf32>
    %cst_37 = arith.constant 0.000000e+00 : f32
    %55 = vector.broadcast %cst_37 : f32 to vector<32x128xf32>
    %56 = arith.maximumf %54, %55 : vector<32x128xf32>
    %57 = vector.shape_cast %56 : vector<32x128xf32> to vector<16x2x128xf32>
    %58 = arith.truncf %57 : vector<16x2x128xf32> to vector<16x2x128xbf16>
    %c1_38 = arith.constant 1 : index
    %c0_39 = arith.constant 0 : index
    %c0_40 = arith.constant 0 : index
    %59 = vector.load %arg10[%c1_38, %c0_39, %c0_40] : memref<18x2x128xbf16, #tpu.memory_space<vmem>>, vector<16x2x128xbf16>
    tpu.vector_store %arg10[%c1_38, %c0_39, %c0_40], %58 {strides = array<i32>} : memref<18x2x128xbf16, #tpu.memory_space<vmem>>, vector<16x2x128xbf16>,
    %cst_41 = arith.constant 0.000000e+00 : bf16
    %60 = vector.broadcast %cst_41 : bf16 to vector<1x2x128xbf16>
    %c0_42 = arith.constant 0 : index
    %c0_43 = arith.constant 0 : index
    %c0_44 = arith.constant 0 : index
    %61 = vector.load %arg10[%c0_42, %c0_43, %c0_44] : memref<18x2x128xbf16, #tpu.memory_space<vmem>>, vector<1x2x128xbf16>
    tpu.vector_store %arg10[%c0_42, %c0_43, %c0_44], %60 {strides = array<i32>} : memref<18x2x128xbf16, #tpu.memory_space<vmem>>, vector<1x2x128xbf16>,
    %cst_45 = arith.constant 0.000000e+00 : bf16
    %62 = vector.broadcast %cst_45 : bf16 to vector<1x2x128xbf16>
    %c17 = arith.constant 17 : index
    %c0_46 = arith.constant 0 : index
    %c0_47 = arith.constant 0 : index
    %63 = vector.load %arg10[%c17, %c0_46, %c0_47] : memref<18x2x128xbf16, #tpu.memory_space<vmem>>, vector<1x2x128xbf16>
    tpu.vector_store %arg10[%c17, %c0_46, %c0_47], %62 {strides = array<i32>} : memref<18x2x128xbf16, #tpu.memory_space<vmem>>, vector<1x2x128xbf16>,
    %c0_48 = arith.constant 0 : index
    %c0_49 = arith.constant 0 : index
    %c0_50 = arith.constant 0 : index
    %64 = vector.load %arg5[%c0_48, %c0_49, %c0_50] : memref<3x128x128xbf16, #tpu.memory_space<vmem>>, vector<1x128x128xbf16>
    %65 = vector.shape_cast %64 : vector<1x128x128xbf16> to vector<128x128xbf16>
    %c1_51 = arith.constant 1 : index
    %c0_52 = arith.constant 0 : index
    %c0_53 = arith.constant 0 : index
    %66 = vector.load %arg5[%c1_51, %c0_52, %c0_53] : memref<3x128x128xbf16, #tpu.memory_space<vmem>>, vector<1x128x128xbf16>
    %67 = vector.shape_cast %66 : vector<1x128x128xbf16> to vector<128x128xbf16>
    %c2_54 = arith.constant 2 : index
    %c0_55 = arith.constant 0 : index
    %c0_56 = arith.constant 0 : index
    %68 = vector.load %arg5[%c2_54, %c0_55, %c0_56] : memref<3x128x128xbf16, #tpu.memory_space<vmem>>, vector<1x128x128xbf16>
    %69 = vector.shape_cast %68 : vector<1x128x128xbf16> to vector<128x128xbf16>
    %c0_57 = arith.constant 0 : index
    %c0_58 = arith.constant 0 : index
    %70 = vector.load %arg6[%c0_57, %c0_58] : memref<1x128xf32, #tpu.memory_space<vmem>>, vector<1x128xf32>
    %cst_59 = arith.constant 0.000000e+00 : f32
    %71 = vector.broadcast %cst_59 : f32 to vector<1x128xf32>
    %cst_60 = arith.constant 0.000000e+00 : f32
    %72 = vector.broadcast %cst_60 : f32 to vector<1x128xf32>
    %c0_61 = arith.constant 0 : index
    %c0_62 = arith.constant 0 : index
    %c0_63 = arith.constant 0 : index
    %73 = vector.load %arg10[%c0_61, %c0_62, %c0_63] : memref<18x2x128xbf16, #tpu.memory_space<vmem>>, vector<16x2x128xbf16>
    %74 = vector.shape_cast %73 : vector<16x2x128xbf16> to vector<32x128xbf16>
    %c1_64 = arith.constant 1 : index
    %c0_65 = arith.constant 0 : index
    %c0_66 = arith.constant 0 : index
    %75 = vector.load %arg10[%c1_64, %c0_65, %c0_66] : memref<18x2x128xbf16, #tpu.memory_space<vmem>>, vector<16x2x128xbf16>
    %76 = vector.shape_cast %75 : vector<16x2x128xbf16> to vector<32x128xbf16>
    %c2_67 = arith.constant 2 : index
    %c0_68 = arith.constant 0 : index
    %c0_69 = arith.constant 0 : index
    %77 = vector.load %arg10[%c2_67, %c0_68, %c0_69] : memref<18x2x128xbf16, #tpu.memory_space<vmem>>, vector<16x2x128xbf16>
    %78 = vector.shape_cast %77 : vector<16x2x128xbf16> to vector<32x128xbf16>
    %cst_70 = arith.constant dense<0.000000e+00> : vector<32x128xf32>
    %79 = tpu.matmul %74, %65, %cst_70 {dimension_numbers = #tpu.dot_dimension_numbers<[1], [0], [0], [1], [0, 0, 1, 1], [], []>} : vector<32x128xbf16>, vector<128x128xbf16>, vector<32x128xf32> -> vector<32x128xf32>
    %cst_71 = arith.constant dense<0.000000e+00> : vector<32x128xf32>
    %80 = tpu.matmul %76, %67, %cst_71 {dimension_numbers = #tpu.dot_dimension_numbers<[1], [0], [0], [1], [0, 0, 1, 1], [], []>} : vector<32x128xbf16>, vector<128x128xbf16>, vector<32x128xf32> -> vector<32x128xf32>
    %81 = arith.addf %79, %80 : vector<32x128xf32>
    %cst_72 = arith.constant dense<0.000000e+00> : vector<32x128xf32>
    %82 = tpu.matmul %78, %69, %cst_72 {dimension_numbers = #tpu.dot_dimension_numbers<[1], [0], [0], [1], [0, 0, 1, 1], [], []>} : vector<32x128xbf16>, vector<128x128xbf16>, vector<32x128xf32> -> vector<32x128xf32>
    %83 = arith.addf %81, %82 : vector<32x128xf32>
    %84 = vector.broadcast %70 : vector<1x128xf32> to vector<32x128xf32>
    %85 = arith.addf %83, %84 : vector<32x128xf32>
    %cst_73 = arith.constant dense<0.000000e+00> : vector<128xf32>
    %86 = vector.multi_reduction <add>, %85, %cst_73 [0] : vector<32x128xf32> to vector<128xf32>
    %87 = vector.shape_cast %86 : vector<128xf32> to vector<1x128xf32>
    %88 = arith.addf %71, %87 : vector<1x128xf32>
    %89 = arith.mulf %85, %85 : vector<32x128xf32>
    %cst_74 = arith.constant dense<0.000000e+00> : vector<128xf32>
    %90 = vector.multi_reduction <add>, %89, %cst_74 [0] : vector<32x128xf32> to vector<128xf32>
    %91 = vector.shape_cast %90 : vector<128xf32> to vector<1x128xf32>
    %92 = arith.addf %72, %91 : vector<1x128xf32>
    %93 = vector.shape_cast %85 : vector<32x128xf32> to vector<16x2x128xf32>
    %94 = arith.truncf %93 : vector<16x2x128xf32> to vector<16x2x128xbf16>
    %c0_75 = arith.constant 0 : index
    %c0_76 = arith.constant 0 : index
    %c0_77 = arith.constant 0 : index
    %95 = vector.load %arg9[%c0_75, %c0_76, %c0_77] : memref<16x2x128xbf16, #tpu.memory_space<vmem>>, vector<16x2x128xbf16>
    tpu.vector_store %arg9[%c0_75, %c0_76, %c0_77], %94 {strides = array<i32>} : memref<16x2x128xbf16, #tpu.memory_space<vmem>>, vector<16x2x128xbf16>,
    %cst_78 = arith.constant 3.125000e-02 : f32
    %96 = vector.broadcast %cst_78 : f32 to vector<1x128xf32>
    %97 = arith.mulf %88, %96 : vector<1x128xf32>
    %cst_79 = arith.constant 3.125000e-02 : f32
    %98 = vector.broadcast %cst_79 : f32 to vector<1x128xf32>
    %99 = arith.mulf %92, %98 : vector<1x128xf32>
    %100 = arith.mulf %97, %97 : vector<1x128xf32>
    %101 = arith.subf %99, %100 : vector<1x128xf32>
    %cst_80 = arith.constant 0.000000e+00 : f32
    %102 = vector.broadcast %cst_80 : f32 to vector<1x128xf32>
    %103 = arith.maximumf %101, %102 : vector<1x128xf32>
    %c0_81 = arith.constant 0 : index
    %c0_82 = arith.constant 0 : index
    %104 = vector.load %arg7[%c0_81, %c0_82] : memref<1x128xf32, #tpu.memory_space<vmem>>, vector<1x128xf32>
    %cst_83 = arith.constant 9.99999974E-6 : f32
    %105 = vector.broadcast %cst_83 : f32 to vector<1x128xf32>
    %106 = arith.addf %103, %105 : vector<1x128xf32>
    %107 = math.rsqrt %106 : vector<1x128xf32>
    %108 = arith.mulf %104, %107 : vector<1x128xf32>
    %c0_84 = arith.constant 0 : index
    %c0_85 = arith.constant 0 : index
    %109 = vector.load %arg8[%c0_84, %c0_85] : memref<1x128xf32, #tpu.memory_space<vmem>>, vector<1x128xf32>
    %110 = arith.mulf %97, %108 : vector<1x128xf32>
    %111 = arith.subf %109, %110 : vector<1x128xf32>
    %c0_86 = arith.constant 0 : index
    %c0_87 = arith.constant 0 : index
    %c0_88 = arith.constant 0 : index
    %112 = vector.load %arg9[%c0_86, %c0_87, %c0_88] : memref<16x2x128xbf16, #tpu.memory_space<vmem>>, vector<16x2x128xbf16>
    %113 = arith.extf %112 : vector<16x2x128xbf16> to vector<16x2x128xf32>
    %114 = vector.shape_cast %113 : vector<16x2x128xf32> to vector<32x128xf32>
    %115 = vector.broadcast %108 : vector<1x128xf32> to vector<32x128xf32>
    %116 = arith.mulf %114, %115 : vector<32x128xf32>
    %117 = vector.broadcast %111 : vector<1x128xf32> to vector<32x128xf32>
    %118 = arith.addf %116, %117 : vector<32x128xf32>
    %cst_89 = arith.constant 0.000000e+00 : f32
    %119 = vector.broadcast %cst_89 : f32 to vector<32x128xf32>
    %120 = arith.maximumf %118, %119 : vector<32x128xf32>
    %121 = vector.shape_cast %120 : vector<32x128xf32> to vector<16x2x128xf32>
    %122 = arith.truncf %121 : vector<16x2x128xf32> to vector<16x2x128xbf16>
    %c0_90 = arith.constant 0 : index
    %c0_91 = arith.constant 0 : index
    %c0_92 = arith.constant 0 : index
    %123 = vector.load %arg9[%c0_90, %c0_91, %c0_92] : memref<16x2x128xbf16, #tpu.memory_space<vmem>>, vector<16x2x128xbf16>
    tpu.vector_store %arg9[%c0_90, %c0_91, %c0_92], %122 {strides = array<i32>} : memref<16x2x128xbf16, #tpu.memory_space<vmem>>, vector<16x2x128xbf16>,
    return
  }
}

</mosaic_0001>

<bundles_post_ra>
// kernel: tpu_custom_call.1
= control target key start
LH: loop header
LB: loop body
LE: loop exit
PB: predicated region body
PF: predicated region fallthrough
CT: control target
= control target key end

     0   :  { %14 = vsyncpa [#allocation4], 0  ;;  %s2901_s0 = inlined_call_operand.hbm [shape: bf16[18,2,128], index: 0, kind: input, shape index: {}]   ;;  %s2902_s1 = inlined_call_operand.hbm [shape: bf16[3,128,128], index: 1, kind: input, shape index: {}]   ;;  %s2903_s2 = inlined_call_operand.vmem [shape: f32[1,128], index: 2, kind: input, shape index: {}]   ;;  %s2904_s3 = inlined_call_operand.vmem [shape: f32[1,128], index: 3, kind: input, shape index: {}]   ;;  %s2905_s4 = inlined_call_operand.vmem [shape: f32[1,128], index: 4, kind: input, shape index: {}]   ;;  %s2906_s5 = inlined_call_operand.hbm [shape: bf16[3,128,128], index: 5, kind: input, shape index: {}]   ;;  %s2907_s6 = inlined_call_operand.vmem [shape: f32[1,128], index: 6, kind: input, shape index: {}]   ;;  %s2908_s7 = inlined_call_operand.vmem [shape: f32[1,128], index: 7, kind: input, shape index: {}]   ;;  %s2909_s8 = inlined_call_operand.vmem [shape: f32[1,128], index: 8, kind: input, shape index: {}]   ;;  %s2910_s9 = inlined_call_operand.hbm [shape: bf16[16,2,128], index: 9, kind: output, shape index: {}]  }
   0x1   :  { %15 = vsyncpa [#allocation7], 0 }
   0x2   :  { %16 = vsyncpa [#allocation5], 0  ;;  %s2647_s30 = smov [#allocation6]   ;;  %s2553_s13 = scalar_lea.hbm %s2902_s1, 3072 }
   0x3   :  { %s34_s10 = sshll.u32 %s2647_s30, 4  ;;  %p2554_p0 = scmp.ne.s32.totalorder %s2902_s1, %s2553_s13  ;;  %s35_s10 = int_to_ptr.vmem [resolvable:$true] %s34_s10 }
   0x4   :  { %p2557_p1 = scmp.lt.u32.totalorder %s2553_s13, %s2902_s1 }
   0x6   :  { %p2559_p2 = pnand %p2557_p1, %p2554_p0 }
   0x8   :  { %2562 = shalt.err (!%p2559_p2)
}
   0x9   :  { %s2563_s18 = scalar_lea.vmem %s35_s10, 3072  ;;  %p2568_p4 = scmp.lt.s32.totalorder %s35_s10, %s35_s10 }
   0xa   :  { %p2564_p3 = scmp.ne.s32.totalorder %s35_s10, %s2563_s18  ;;  %p2569_p5 = scmp.lt.s32.totalorder %s2563_s18, %s2563_s18 }
   0xc   :  { %p2570_p6 = por %p2569_p5, %p2568_p4 }
   0xe   :  { %p2571_p7 = pnand %p2570_p6, %p2564_p3 }
  0x10   :  { %2574 = shalt.err (!%p2571_p7)
}
  0x11   :  { %s2648_s19 = smov 64   ;;  %s2649_s20 = smov 4  }
  0x12   :  { %40 = dma.hbm_to_vmem [thread:$0]  %s2902_s1, 3072, %s35_s10, [#allocation7], %s2648_s19, %s2648_s19, %s2649_s20  }
  0x13   :  { %s2650_s23 = smov [#allocation3]   ;;  %s2575_s27 = scalar_lea.hbm %s2901_s0, 288 }
  0x14   :  { %s22_s24 = sshll.u32 %s2650_s23, 4  ;;  %p2576_p8 = scmp.ne.s32.totalorder %s2901_s0, %s2575_s27  ;;  %s23_s24 = int_to_ptr.vmem [resolvable:$true] %s22_s24 }
  0x15   :  { %p2579_p9 = scmp.lt.u32.totalorder %s2575_s27, %s2901_s0 }
  0x17   :  { %p2581_p10 = pnand %p2579_p9, %p2576_p8 }
  0x19   :  { %2584 = shalt.err (!%p2581_p10)
}
  0x1a   :  { %s2585_s12 = scalar_lea.vmem %s23_s24, 288  ;;  %p2590_p12 = scmp.lt.s32.totalorder %s23_s24, %s23_s24 }
  0x1b   :  { %p2586_p11 = scmp.ne.s32.totalorder %s23_s24, %s2585_s12  ;;  %p2591_p13 = scmp.lt.s32.totalorder %s2585_s12, %s2585_s12 }
  0x1d   :  { %p2592_p0 = por %p2591_p13, %p2590_p12 }
  0x1f   :  { %p2593_p1 = pnand %p2592_p0, %p2586_p11 }
  0x21   :  { %2596 = shalt.err (!%p2593_p1)
}
  0x22   :  { %s2651_s1 = smov 16   ;;  %s2652_s10 = smov 1  }
  0x23   :  { %28 = dma.hbm_to_vmem [thread:$0]  %s2901_s0, 288, %s23_s24, [#allocation4], %s2651_s1, %s2651_s1, %s2652_s10  }
  0x24   :  { %s2653_s15 = smov [#allocation8]   ;;  %s2597_s21 = scalar_lea.hbm %s2906_s5, 3072 }
  0x25   :  { %s52_s16 = sshll.u32 %s2653_s15, 4  ;;  %p2598_p2 = scmp.ne.s32.totalorder %s2906_s5, %s2597_s21  ;;  %s53_s16 = int_to_ptr.vmem [resolvable:$true] %s52_s16 }
  0x26   :  { %p2601_p3 = scmp.lt.u32.totalorder %s2597_s21, %s2906_s5 }
  0x28   :  { %p2603_p4 = pnand %p2601_p3, %p2598_p2 }
  0x2a   :  { %2606 = shalt.err (!%p2603_p4)
}
  0x2b   :  { %s2607_s27 = scalar_lea.vmem %s53_s16, 3072  ;;  %p2612_p6 = scmp.lt.s32.totalorder %s53_s16, %s53_s16 }
  0x2c   :  { %p2608_p5 = scmp.ne.s32.totalorder %s53_s16, %s2607_s27  ;;  %p2613_p7 = scmp.lt.s32.totalorder %s2607_s27, %s2607_s27 }
  0x2e   :  { %p2614_p8 = por %p2613_p7, %p2612_p6 }
  0x30   :  { %p2615_p9 = pnand %p2614_p8, %p2608_p5 }
  0x32   :  { %2618 = shalt.err (!%p2615_p9)
}
  0x33   :  { %58 = dma.hbm_to_vmem [thread:$0]  %s2906_s5, 3072, %s53_s16, [#allocation7], %s2648_s19, %s2648_s19, %s2649_s20  }
  0x34   :  { %2641 = dma.done.wait [#allocation4], 288  }
  0x35   :  { %2642 = vsyncadd [#allocation4], 4294967008 }
  0x36   :  { %2643 = dma.done.wait [#allocation7], 6144  }
  0x37   :  { %2644 = vsyncadd [#allocation7], 4294961152  ;;  %v2654_v0 = vmov 1966171168   ;;  %v199_v2 = vlaneseq  ;;  %v2501_v3 = vld [vmem:[#allocation6 + $0x40] sm:$0xff]   ;;  %v2502_v4 = vld [vmem:[#allocation6 + $0x48] sm:$0xff]  }
  0x38   :  { %v197_v1 = vunpack.c.l.s4 %v2654_v0  ;;  %2354 = vmatprep.subr.bf16.mxu0 %v2501_v3  ;;  %v2503_v7 = vld [vmem:[#allocation6 + $0x50] sm:$0xff]   ;;  %v2504_v8 = vld [vmem:[#allocation6 + $0x58] sm:$0xff]   ;;  %v143_v10 = vld [vmem:[#allocation3 + $0x1] sm:$0x1] }
  0x39   :  { %2355 = vmatpush3.bf16.msra.mxu0 %v2501_v3  ;;  %v2753_v6 = vshrl.u32 %v199_v2, 7  ;;  %v144_v11 = vld [vmem:[#allocation3 + $0x2] sm:$0x1]  ;;  %v145_v12 = vld [vmem:[#allocation3 + $0x3] sm:$0x1]  ;;  %v2505_v21 = vld [vmem:[#allocation6 + $0x60] sm:$0xff]  }
  0x3a   :  { %v198_v5 = vunpack.c.0.s8 %v197_v1  ;;  %2356 = vmatprep.subr.bf16.mxu0 %v2502_v4  ;;  %v146_v13 = vld [vmem:[#allocation3 + $0x4] sm:$0x1]  ;;  %v147_v14 = vld [vmem:[#allocation3 + $0x5] sm:$0x1]  ;;  %v148_v15 = vld [vmem:[#allocation3 + $0x6] sm:$0x1]  ;;  %v192_v16 = vcombine.low %v143_v10, %v144_v11 }
  0x3b   :  { %v149_v17 = vld [vmem:[#allocation3 + $0x7] sm:$0x1]  ;;  %v150_v18 = vld [vmem:[#allocation3 + $0x8] sm:$0x1]  ;;  %v193_v19 = vcombine.low %v145_v12, %v146_v13  ;;  %v194_v20 = vcombine.low %v147_v14, %v148_v15  ;;  %v151_v24 = vld [vmem:[#allocation3 + $0x9] sm:$0x1] }
  0x3c   :  { %v2756_v9 = vsub.s32 %v198_v5, %v2753_v6  ;;  %v195_v22 = vcombine.low %v149_v17, %v150_v18  ;;  %v152_v27 = vld [vmem:[#allocation3 + $0xa] sm:$0x1]  ;;  %v153_v28 = vld [vmem:[#allocation3 + $0xb] sm:$0x1]  ;;  %v154_v29 = vld [vmem:[#allocation3 + $0xc] sm:$0x1] }
  0x3d   :  { %2357 = vmatpush3.bf16.msra.mxu0 %v2502_v4  ;;  %v155_v31 = vld [vmem:[#allocation3 + $0xd] sm:$0x1]  ;;  %v156_v32 = vld [vmem:[#allocation3 + $0xe] sm:$0x1]  ;;  %v157_v33 = vld [vmem:[#allocation3 + $0xf] sm:$0x1]  ;;  %v241_v36 = vcombine.low %v151_v24, %v152_v27  ;;  %v242_v37 = vcombine.low %v153_v28, %v154_v29 }
  0x3e   :  { %2358 = vmatprep.subr.bf16.mxu0 %v2503_v7  ;;  %v202_v23 = vrot.slane %v192_v16, %v2756_v9  ;;  %v209_v25 = vrot.slane %v193_v19, %v2756_v9  ;;  %v216_v26 = vrot.slane %v194_v20, %v2756_v9  ;;  %v223_v30 = vrot.slane %v195_v22, %v2756_v9  ;;  %v158_v35 = vld [vmem:[#allocation3 + $0x10] sm:$0x1]  ;;  %v2506_v41 = vld [vmem:[#allocation6 + $0x68] sm:$0xff]   ;;  %v2507_v49 = vld [vmem:[#allocation6 + $0x70] sm:$0xff]  }
  0x3f   :  { %v243_v38 = vcombine.low %v155_v31, %v156_v32  ;;  %v244_v40 = vcombine.low %v157_v33, %v158_v35  ;;  %v251_v44 = vrot.slane %v241_v36, %v2756_v9  ;;  %v258_v45 = vrot.slane %v242_v37, %v2756_v9  ;;  %v126_v50 = vld [vmem:[#allocation3] sm:$0x1]  ;;  %v127_v51 = vld [vmem:[#allocation3 + $0x1] sm:$0x1]  ;;  %v128_v54 = vld [vmem:[#allocation3 + $0x2] sm:$0x1] }
  0x40   :  { %v224_v34 = vcombine.low %v202_v23, %v209_v25  ;;  %v225_v39 = vcombine.low %v216_v26, %v223_v30  ;;  %v129_v55 = vld [vmem:[#allocation3 + $0x3] sm:$0x1]  ;;  %v130_v56 = vld [vmem:[#allocation3 + $0x4] sm:$0x1]  ;;  %v405_v57 = vcombine.low %v126_v50, %v127_v51  ;;  %v131_v58 = vld [vmem:[#allocation3 + $0x5] sm:$0x1] }
  0x41   :  { %2359 = vmatpush3.bf16.msra.mxu0 %v2503_v7  ;;  %v265_v46 = vrot.slane %v243_v38, %v2756_v9  ;;  %v272_v47 = vrot.slane %v244_v40, %v2756_v9  ;;  %v273_v52 = vcombine.low %v251_v44, %v258_v45  ;;  %v132_v59 = vld [vmem:[#allocation3 + $0x6] sm:$0x1]  ;;  %v133_v60 = vld [vmem:[#allocation3 + $0x7] sm:$0x1]  ;;  %v406_v61 = vcombine.low %v128_v54, %v129_v55  ;;  %v2508_v62 = vld [vmem:[#allocation6 + $0x78] sm:$0xff]  }
  0x42   :  { %2360 = vmatprep.subr.bf16.mxu0 %v2504_v8  ;;  %v232_v42 = vrot.slane %v224_v34, %v2756_v9  ;;  %v239_v43 = vrot.slane %v225_v39, %v2756_v9  ;;  %v407_v63 = vcombine.low %v130_v56, %v131_v58  ;;  %v408_v0 = vcombine.low %v132_v59, %v133_v60  ;;  %v2509_v10 = vld [vmem:[#allocation6] sm:$0xff]   ;;  %v2510_v15 = vld [vmem:[#allocation6 + $0x8] sm:$0xff]   ;;  %v2511_v17 = vld [vmem:[#allocation6 + $0x10] sm:$0xff]  }
  0x43   :  { %v274_v53 = vcombine.low %v265_v46, %v272_v47  ;;  %v415_v1 = vrot.slane %v405_v57, %v2756_v9  ;;  %v422_v2 = vrot.slane %v406_v61, %v2756_v9  ;;  %v281_v3 = vrot.slane %v273_v52, %v2756_v9  ;;  %v2512_v18 = vld [vmem:[#allocation6 + $0x18] sm:$0xff]   ;;  %v134_v19 = vld [vmem:[#allocation3 + $0x8] sm:$0x1]  ;;  %v135_v20 = vld [vmem:[#allocation3 + $0x9] sm:$0x1] }
  0x44   :  { %v240_v48 = vcombine.low %v232_v42, %v239_v43  ;;  %v429_v5 = vrot.slane %v407_v63, %v2756_v9  ;;  %v436_v7 = vrot.slane %v408_v0, %v2756_v9  ;;  %v137_v22 = vld [vmem:[#allocation3 + $0xb] sm:$0x1]  ;;  %v138_v23 = vld [vmem:[#allocation3 + $0xc] sm:$0x1]  ;;  %v139_v24 = vld [vmem:[#allocation3 + $0xd] sm:$0x1]  ;;  %v454_v37 = vcombine.low %v134_v19, %v135_v20 }
  0x45   :  { %2361 = vmatpush3.bf16.msra.mxu0 %v2504_v8  ;;  %v288_v4 = vrot.slane %v274_v53, %v2756_v9  ;;  %v437_v8 = vcombine.low %v415_v1, %v422_v2  ;;  %v140_v25 = vld [vmem:[#allocation3 + $0xe] sm:$0x1]  ;;  %v141_v26 = vld [vmem:[#allocation3 + $0xf] sm:$0x1]  ;;  %v2513_v27 = vld [vmem:[#allocation6 + $0x20] sm:$0xff]   ;;  %v456_v39 = vcombine.low %v138_v23, %v139_v24 }
  0x46   :  { %2362 = vmatprep.subr.bf16.mxu0 %v2505_v21  ;;  %2370 = vmatprep.mubr.bf16.mxu0 %v240_v48  ;;  %v438_v11 = vcombine.low %v429_v5, %v436_v7  ;;  %v160_v28 = vld [vmem:[#allocation3 + $0x2] sm:$0x1]  ;;  %v161_v29 = vld [vmem:[#allocation3 + $0x3] sm:$0x1]  ;;  %v162_v30 = vld [vmem:[#allocation3 + $0x4] sm:$0x1]  ;;  %v457_v40 = vcombine.low %v140_v25, %v141_v26  ;;  %v464_v46 = vrot.slane %v454_v37, %v2756_v9 }
  0x47   :  { %v445_v12 = vrot.slane %v437_v8, %v2756_v9  ;;  %v289_v13 = vcombine.low %v281_v3, %v288_v4  ;;  %v163_v31 = vld [vmem:[#allocation3 + $0x5] sm:$0x1]  ;;  %v164_v32 = vld [vmem:[#allocation3 + $0x6] sm:$0x1]  ;;  %v165_v33 = vld [vmem:[#allocation3 + $0x7] sm:$0x1]  ;;  %v478_v48 = vrot.slane %v456_v39, %v2756_v9 }
  0x48   :  { %v452_v14 = vrot.slane %v438_v11, %v2756_v9  ;;  %v166_v34 = vld [vmem:[#allocation3 + $0x8] sm:$0x1]  ;;  %v167_v35 = vld [vmem:[#allocation3 + $0x9] sm:$0x1]  ;;  %v2514_v36 = vld [vmem:[#allocation6 + $0x28] sm:$0xff]   ;;  %v619_v42 = vcombine.low %v162_v30, %v163_v31  ;;  %v620_v43 = vcombine.low %v164_v32, %v165_v33  ;;  %v2655_v37 = vmov 0  }
  0x49   :  { %2363 = vmatpush3.bf16.msra.mxu0 %v2505_v21  ;;  %v136_v21 = vld [vmem:[#allocation3 + $0xa] sm:$0x1]  ;;  %v621_v44 = vcombine.low %v166_v34, %v167_v35  ;;  %v2515_v45 = vld [vmem:[#allocation6 + $0x30] sm:$0xff]   ;;  %v2517_v63 = vld [vmem:[#allocation6 + $0x80] sm:$0xff]   ;;  %1150 = vst [vmem:[#allocation2] sm:$0x1] %v2655_v37 }
  0x4a   :  { %2364 = vmatprep.subr.bf16.mxu0 %v2506_v41  ;;  %v453_v16 = vcombine.low %v445_v12, %v452_v14  ;;  %v455_v38 = vcombine.low %v136_v21, %v137_v22  ;;  %v635_v51 = vrot.slane %v619_v42, %v2756_v9  ;;  %v642_v52 = vrot.slane %v620_v43, %v2756_v9  ;;  %v2516_v58 = vld [vmem:[#allocation6 + $0x38] sm:$0xff]   ;;  %v2518_v2 = vld [vmem:[#allocation6 + $0x88] sm:$0xff]   ;;  %v2519_v3 = vld [vmem:[#allocation6 + $0x90] sm:$0xff]  }
  0x4b   :  { %v649_v53 = vrot.slane %v621_v44, %v2756_v9  ;;  %v2520_v4 = vld [vmem:[#allocation6 + $0x98] sm:$0xff]   ;;  %v2522_v20 = vld [vmem:[#allocation6 + $0xa8] sm:$0xff]   ;;  %v2523_v25 = vld [vmem:[#allocation6 + $0xb0] sm:$0xff]   ;;  %1152 = vst [vmem:[#allocation2 + $0x11] sm:$0x1] %v2655_v37 }
  0x4c   :  { %v471_v47 = vrot.slane %v455_v38, %v2756_v9  ;;  %v168_v5 = vld [vmem:[#allocation3 + $0xa] sm:$0x1]  ;;  %v169_v7 = vld [vmem:[#allocation3 + $0xb] sm:$0x1]  ;;  %v170_v8 = vld [vmem:[#allocation3 + $0xc] sm:$0x1] }
  0x4d   :  { %2365 = vmatpush3.bf16.msra.mxu0 %v2506_v41  ;;  %v618_v41 = vcombine.low %v160_v28, %v161_v29  ;;  %v651_v57 = vcombine.low %v642_v52, %v649_v53  ;;  %v172_v11 = vld [vmem:[#allocation3 + $0xe] sm:$0x1]  ;;  %v173_v12 = vld [vmem:[#allocation3 + $0xf] sm:$0x1]  ;;  %v175_v14 = vld [vmem:[#allocation3 + $0x11] sm:$0x1] }
  0x4e   :  { %2366 = vmatprep.subr.bf16.mxu0 %v2507_v49  ;;  %v486_v54 = vcombine.low %v464_v46, %v471_v47  ;;  %v2524_v28 = vld [vmem:[#allocation6 + $0xb8] sm:$0xff]   ;;  %v2525_v32 = vld [vmem:[#allocation8 + $0x40] sm:$0xff]   ;;  %v2526_v33 = vld [vmem:[#allocation8 + $0x48] sm:$0xff]   ;;  %v2656_v42 = vmov 1983009808  }
  0x4f   :  { %v628_v50 = vrot.slane %v618_v41, %v2756_v9  ;;  %2414 = vmatprep.subr.bf16.mxu1 %v2525_v32  ;;  %v2527_v34 = vld [vmem:[#allocation8 + $0x50] sm:$0xff]   ;;  %v2528_v35 = vld [vmem:[#allocation8 + $0x58] sm:$0xff]   ;;  %v2530_v38 = vld [vmem:[#allocation8 + $0x68] sm:$0xff]   ;;  %v859_v43 = vunpack.c.l.s4 %v2656_v42 }
  0x50   :  { %v494_v59 = vrot.slane %v486_v54, %v2756_v9  ;;  %2415 = vmatpush3.bf16.msra.mxu1 %v2525_v32  ;;  %v2531_v39 = vld [vmem:[#allocation8 + $0x70] sm:$0xff]   ;;  %v2794_v41 = vld [vmem:[#allocation8] sm:$0xff]  }
  0x51   :  { %2367 = vmatpush3.bf16.msra.mxu0 %v2507_v49  ;;  %v485_v49 = vrot.slane %v457_v40, %v2756_v9  ;;  %v650_v56 = vcombine.low %v628_v50, %v635_v51  ;;  %2416 = vmatprep.subr.bf16.mxu1 %v2526_v33  ;;  %v2532_v40 = vld [vmem:[#allocation8 + $0x78] sm:$0xff]   ;;  %v860_v44 = vunpack.c.0.s8 %v859_v43 }
  0x52   :  { %2368 = vmatprep.subr.bf16.mxu0 %v2508_v62 }
  0x53   :  { %v487_v55 = vcombine.low %v478_v48, %v485_v49  ;;  %v658_v61 = vrot.slane %v650_v56, %v2756_v9  ;;  %v2801_v46 = vsub.s32 %v860_v44, %v2753_v6 }
  0x54   :  { %2417 = vmatpush3.bf16.msra.mxu1 %v2526_v33 }
  0x55   :  { %2369 = vmatpush3.bf16.msra.mxu0 %v2508_v62  ;;  %v501_v60 = vrot.slane %v487_v55, %v2756_v9  ;;  %v665_v62 = vrot.slane %v651_v57, %v2756_v9  ;;  %2418 = vmatprep.subr.bf16.mxu1 %v2527_v34 }
  0x56   :  { %2374 = vmatprep.subr.bf16.mxu0 %v2509_v10 }
  0x57   :  { %v502_v0 = vcombine.low %v494_v59, %v501_v60  ;;  %v666_v1 = vcombine.low %v658_v61, %v665_v62 }
  0x58   :  { %2371 = vmatmul.mubr.bf16.vlgmr.msra.gmra.mrb[0].mxu0 %v289_v13  ;;  %v174_v13 = vld [vmem:[#allocation3 + $0x10] sm:$0x1]  ;;  %2419 = vmatpush3.bf16.msra.mxu1 %v2527_v34 }
  0x59   :  { %2375 = vmatpush3.bf16.msra.mxu0 %v2509_v10  ;;  %2390 = vmatprep.mubr.bf16.mxu0 %v453_v16  ;;  %v171_v10 = vld [vmem:[#allocation3 + $0xd] sm:$0x1]  ;;  %v667_v16 = vcombine.low %v168_v5, %v169_v7  ;;  %v670_v19 = vcombine.low %v174_v13, %v175_v14 }
  0x5a   :  { %2376 = vmatprep.subr.bf16.mxu0 %v2510_v15  ;;  %2420 = vmatprep.subr.bf16.mxu1 %v2528_v35 }
  0x5b   :  { %v677_v21 = vrot.slane %v667_v16, %v2756_v9  ;;  %v698_v24 = vrot.slane %v670_v19, %v2756_v9 }
  0x5c   :  { %2421 = vmatpush3.bf16.msra.mxu1 %v2528_v35 }
  0x5d   :  { %2377 = vmatpush3.bf16.msra.mxu0 %v2510_v15  ;;  %v2521_v15 = vld [vmem:[#allocation6 + $0xa0] sm:$0xff]  }
  0x5e   :  { %2378 = vmatprep.subr.bf16.mxu0 %v2511_v17 }
  0x61   :  { %2379 = vmatpush3.bf16.msra.mxu0 %v2511_v17  ;;  %v668_v17 = vcombine.low %v170_v8, %v171_v10 }
  0x62   :  { %2380 = vmatprep.subr.bf16.mxu0 %v2512_v18 }
  0x63   :  { %v684_v22 = vrot.slane %v668_v17, %v2756_v9 }
  0x65   :  { %2381 = vmatpush3.bf16.msra.mxu0 %v2512_v18  ;;  %v669_v18 = vcombine.low %v172_v11, %v173_v12  ;;  %v699_v26 = vcombine.low %v677_v21, %v684_v22 }
  0x66   :  { %2382 = vmatprep.subr.bf16.mxu0 %v2513_v27 }
  0x67   :  { %v691_v23 = vrot.slane %v669_v18, %v2756_v9  ;;  %v707_v29 = vrot.slane %v699_v26, %v2756_v9 }
  0x69   :  { %2383 = vmatpush3.bf16.msra.mxu0 %v2513_v27  ;;  %v700_v27 = vcombine.low %v691_v23, %v698_v24 }
  0x6a   :  { %2384 = vmatprep.subr.bf16.mxu0 %v2514_v36 }
  0x6b   :  { %v714_v30 = vrot.slane %v700_v27, %v2756_v9 }
  0x6d   :  { %2385 = vmatpush3.bf16.msra.mxu0 %v2514_v36  ;;  %v715_v31 = vcombine.low %v707_v29, %v714_v30  ;;  %v2529_v36 = vld [vmem:[#allocation8 + $0x60] sm:$0xff]  }
  0x6e   :  { %2386 = vmatprep.subr.bf16.mxu0 %v2515_v45  ;;  %2422 = vmatprep.subr.bf16.mxu1 %v2529_v36 }
  0x6f   :  { %2423 = vmatpush3.bf16.msra.mxu1 %v2529_v36 }
  0x70   :  { %2424 = vmatprep.subr.bf16.mxu1 %v2530_v38 }
  0x71   :  { %2387 = vmatpush3.bf16.msra.mxu0 %v2515_v45  ;;  %v2268_v45 = vld [vmem:[%s2903_s2] ss:$0 sm:$0xff] }
  0x72   :  { %2388 = vmatprep.subr.bf16.mxu0 %v2516_v58 }
  0x73   :  { %2425 = vmatpush3.bf16.msra.mxu1 %v2530_v38 }
  0x74   :  { %2426 = vmatprep.subr.bf16.mxu1 %v2531_v39 }
  0x75   :  { %2389 = vmatpush3.bf16.msra.mxu0 %v2516_v58 }
  0x76   :  { %2394 = vmatprep.subr.bf16.mxu0 %v2517_v63 }
  0x77   :  { %2427 = vmatpush3.bf16.msra.mxu1 %v2531_v39 }
  0x78   :  { %2391 = vmatmul.mubr.bf16.vlgmr.msra.gmra.mrb[0].mxu0 %v502_v0  ;;  %2428 = vmatprep.subr.bf16.mxu1 %v2532_v40 }
  0x79   :  { %2395 = vmatpush3.bf16.msra.mxu0 %v2517_v63  ;;  %2410 = vmatprep.mubr.bf16.mxu0 %v666_v1 }
  0x7a   :  { %2396 = vmatprep.subr.bf16.mxu0 %v2518_v2 }
  0x7b   :  { %2429 = vmatpush3.bf16.msra.mxu1 %v2532_v40 }
  0x7c   :  { %2434 = vmatprep.subr.bf16.mxu1 %v2794_v41 }
  0x7d   :  { %2397 = vmatpush3.bf16.msra.mxu0 %v2518_v2 }
  0x7e   :  { %2398 = vmatprep.subr.bf16.mxu0 %v2519_v3 }
  0x81   :  { %2399 = vmatpush3.bf16.msra.mxu0 %v2519_v3 }
  0x82   :  { %2400 = vmatprep.subr.bf16.mxu0 %v2520_v4 }
  0x85   :  { %2401 = vmatpush3.bf16.msra.mxu0 %v2520_v4 }
  0x86   :  { %2402 = vmatprep.subr.bf16.mxu0 %v2521_v15 }
  0x89   :  { %2403 = vmatpush3.bf16.msra.mxu0 %v2521_v15 }
  0x8a   :  { %2404 = vmatprep.subr.bf16.mxu0 %v2522_v20 }
  0x8d   :  { %2405 = vmatpush3.bf16.msra.mxu0 %v2522_v20 }
  0x8e   :  { %2406 = vmatprep.subr.bf16.mxu0 %v2523_v25 }
  0x91   :  { %2407 = vmatpush3.bf16.msra.mxu0 %v2523_v25 }
  0x92   :  { %2408 = vmatprep.subr.bf16.mxu0 %v2524_v28 }
  0x95   :  { %2409 = vmatpush3.bf16.msra.mxu0 %v2524_v28 }
  0x98   :  { %2411 = vmatmul.mubr.bf16.vlgmr.msra.gmra.mrb[0].mxu0 %v715_v31 }
 0x16b   :  { %v2412_v47 = vpop.f32.mrb[0].mxu0 }
 0x16c   :  { %v827_v48 = vadd.f32 %v2412_v47, %v2268_v45  ;;  %v800_v49 = vpop.f32.mrb[1].mxu0 }
 0x16d   :  { %v825_v50 = vadd.f32 %v2268_v45, %v800_v49  ;;  %v2413_v51 = vpop.f32.mrb[2].mxu0 }
 0x16e   :  { %v891_v52 = vcombine.high %v827_v48, %v827_v48  ;;  %v898_v53 = vrot.slane %v827_v48, %v2801_v46  ;;  %v828_v54 = vadd.f32 %v2413_v51, %v2268_v45  ;;  %v803_v55 = vpop.f32.mrb[3].mxu0  ;;  %v841_v25 = vmul.f32 %v827_v48, %v827_v48 }
 0x16f   :  { %v839_v56 = vmul.f32 %v825_v50, %v825_v50  ;;  %v857_v57 = vcombine.high %v825_v50, %v825_v50  ;;  %v864_v58 = vrot.slane %v825_v50, %v2801_v46  ;;  %v826_v62 = vadd.f32 %v2268_v45, %v803_v55 }
 0x170   :  { %v905_v59 = vrot.slane %v891_v52, %v2801_v46  ;;  %v906_v60 = vcombine.high %v898_v53, %v898_v53  ;;  %v949_v61 = vpack.c.bf16 %v898_v53, %v898_v53  ;;  %v908_v2 = vcombine.high %v828_v54, %v828_v54 }
 0x171   :  { %v871_v63 = vrot.slane %v857_v57, %v2801_v46  ;;  %v872_v0 = vcombine.high %v864_v58, %v864_v58  ;;  %v941_v1 = vpack.c.bf16 %v864_v58, %v864_v58  ;;  %v915_v7 = vrot.slane %v828_v54, %v2801_v46 }
 0x172   :  { %v907_v3 = vcombine.high %v905_v59, %v905_v59  ;;  %v950_v4 = vpack.c.bf16 %v906_v60, %v906_v60  ;;  %v951_v5 = vpack.c.bf16 %v905_v59, %v905_v59  ;;  %966 = vst [vmem:[#allocation2 + $0x9] sm:$0x1] %v949_v61  ;;  %v922_v12 = vrot.slane %v908_v2, %v2801_v46  ;;  %v979_v59 = vld [vmem:[%s2904_s3] sm:$0x1] }
 0x173   :  { %v873_v8 = vcombine.high %v871_v63, %v871_v63  ;;  %v942_v10 = vpack.c.bf16 %v872_v0, %v872_v0  ;;  %v943_v11 = vpack.c.bf16 %v871_v63, %v871_v63  ;;  %958 = vst [vmem:[#allocation2 + $0x1] sm:$0x1] %v941_v1  ;;  %v923_v14 = vcombine.high %v915_v7, %v915_v7  ;;  %v983_v2 = vld [vmem:[%s2905_s4] sm:$0x1] }
 0x174   :  { %v952_v13 = vpack.c.bf16 %v907_v3, %v907_v3  ;;  %967 = vst [vmem:[#allocation2 + $0xa] sm:$0x1] %v950_v4  ;;  %968 = vst [vmem:[#allocation2 + $0xb] sm:$0x1] %v951_v5  ;;  %v953_v15 = vpack.c.bf16 %v915_v7, %v915_v7  ;;  %v829_v16 = vadd.f32 %v826_v62, %v825_v50  ;;  %v2815_v60 = vsub.s32 0, %v2753_v6 }
 0x175   :  { %v944_v17 = vpack.c.bf16 %v873_v8, %v873_v8  ;;  %959 = vst [vmem:[#allocation2 + $0x2] sm:$0x1] %v942_v10  ;;  %960 = vst [vmem:[#allocation2 + $0x3] sm:$0x1] %v943_v11  ;;  %v924_v18 = vcombine.high %v922_v12, %v922_v12  ;;  %v955_v19 = vpack.c.bf16 %v922_v12, %v922_v12 }
 0x176   :  { %v840_v20 = vmul.f32 %v826_v62, %v826_v62  ;;  %969 = vst [vmem:[#allocation2 + $0xc] sm:$0x1] %v952_v13  ;;  %v954_v21 = vpack.c.bf16 %v923_v14, %v923_v14  ;;  %970 = vst [vmem:[#allocation2 + $0xd] sm:$0x1] %v953_v15  ;;  %v830_v22 = vadd.f32 %v829_v16, %v827_v48 }
 0x177   :  { %v874_v23 = vcombine.high %v826_v62, %v826_v62  ;;  %v881_v24 = vrot.slane %v826_v62, %v2801_v46  ;;  %961 = vst [vmem:[#allocation2 + $0x4] sm:$0x1] %v944_v17  ;;  %v956_v26 = vpack.c.bf16 %v924_v18, %v924_v18  ;;  %972 = vst [vmem:[#allocation2 + $0xf] sm:$0x1] %v955_v19 }
 0x178   :  { %v843_v27 = vadd.f32 %v840_v20, %v839_v56  ;;  %971 = vst [vmem:[#allocation2 + $0xe] sm:$0x1] %v954_v21  ;;  %v831_v28 = vadd.f32 %v830_v22, %v828_v54  ;;  %v842_v32 = vmul.f32 %v828_v54, %v828_v54 }
 0x179   :  { %v888_v29 = vrot.slane %v874_v23, %v2801_v46  ;;  %v889_v30 = vcombine.high %v881_v24, %v881_v24  ;;  %v945_v31 = vpack.c.bf16 %v881_v24, %v881_v24  ;;  %973 = vst [vmem:[#allocation2 + $0x10] sm:$0x1] %v956_v26  ;;  %v994_v0 = vld [vmem:[#allocation2 + $0x9] sm:$0x1] }
 0x17a   :  { %v844_v33 = vadd.f32 %v843_v27, %v841_v25  ;;  %v832_v34 = vrot.slane %v831_v28, 4  ;;  %v986_v63 = vld [vmem:[#allocation2 + $0x1] sm:$0x1]  ;;  %v1010_v14 = vunpack.c.l.bf16 %v994_v0 }
 0x17b   :  { %v890_v35 = vcombine.high %v888_v29, %v888_v29  ;;  %v946_v36 = vpack.c.bf16 %v889_v30, %v889_v30  ;;  %v947_v37 = vpack.c.bf16 %v888_v29, %v888_v29  ;;  %962 = vst [vmem:[#allocation2 + $0x5] sm:$0x1] %v945_v31  ;;  %v995_v1 = vld [vmem:[#allocation2 + $0xa] sm:$0x1]  ;;  %v996_v4 = vld [vmem:[#allocation2 + $0xb] sm:$0x1]  ;;  %v1002_v13 = vunpack.c.l.bf16 %v986_v63 }
 0x17c   :  { %v845_v38 = vadd.f32 %v844_v33, %v842_v32  ;;  %v833_v39 = vadd.f32 %v832_v34, %v831_v28  ;;  %v987_v3 = vld [vmem:[#allocation2 + $0x2] sm:$0x1]  ;;  %v988_v7 = vld [vmem:[#allocation2 + $0x3] sm:$0x1]  ;;  %v1011_v15 = vunpack.c.l.bf16 %v995_v1  ;;  %v1012_v20 = vunpack.c.l.bf16 %v996_v4 }
 0x17d   :  { %v948_v40 = vpack.c.bf16 %v890_v35, %v890_v35  ;;  %963 = vst [vmem:[#allocation2 + $0x6] sm:$0x1] %v946_v36  ;;  %964 = vst [vmem:[#allocation2 + $0x7] sm:$0x1] %v947_v37  ;;  %v997_v8 = vld [vmem:[#allocation2 + $0xc] sm:$0x1]  ;;  %v1003_v26 = vunpack.c.l.bf16 %v987_v3  ;;  %v1004_v27 = vunpack.c.l.bf16 %v988_v7 }
 0x17e   :  { %v846_v42 = vrot.slane %v845_v38, 4  ;;  %v834_v43 = vrot.slane %v833_v39, 2  ;;  %v998_v10 = vld [vmem:[#allocation2 + $0xd] sm:$0x1]  ;;  %v989_v12 = vld [vmem:[#allocation2 + $0x4] sm:$0x1]  ;;  %v1013_v28 = vunpack.c.l.bf16 %v997_v8 }
 0x17f   :  { %965 = vst [vmem:[#allocation2 + $0x8] sm:$0x1] %v948_v40  ;;  %v1000_v6 = vld [vmem:[#allocation2 + $0xf] sm:$0x1]  ;;  %v999_v18 = vld [vmem:[#allocation2 + $0xe] sm:$0x1]  ;;  %v1014_v29 = vunpack.c.l.bf16 %v998_v10  ;;  %v1005_v30 = vunpack.c.l.bf16 %v989_v12 }
 0x180   :  { %v847_v44 = vadd.f32 %v846_v42, %v845_v38  ;;  %v835_v45 = vadd.f32 %v834_v43, %v833_v39  ;;  %v1001_v19 = vld [vmem:[#allocation2 + $0x10] sm:$0x1]  ;;  %v1016_v31 = vunpack.c.l.bf16 %v1000_v6  ;;  %v1015_v35 = vunpack.c.l.bf16 %v999_v18 }
 0x181   :  { %v1017_v36 = vunpack.c.l.bf16 %v1001_v19 }
 0x182   :  { %v848_v47 = vrot.slane %v847_v44, 2  ;;  %v836_v48 = vrot.slane %v835_v45, 1  ;;  %v990_v17 = vld [vmem:[#allocation2 + $0x5] sm:$0x1] }
 0x183   :  { %v1006_v34 = vunpack.c.l.bf16 %v990_v17 }
 0x184   :  { %v849_v49 = vadd.f32 %v848_v47, %v847_v44  ;;  %v837_v50 = vadd.f32 %v836_v48, %v835_v45  ;;  %v991_v23 = vld [vmem:[#allocation2 + $0x6] sm:$0x1]  ;;  %v992_v24 = vld [vmem:[#allocation2 + $0x7] sm:$0x1] }
 0x185   :  { %v1007_v38 = vunpack.c.l.bf16 %v991_v23  ;;  %v1008_v39 = vunpack.c.l.bf16 %v992_v24 }
 0x186   :  { %v850_v51 = vrot.slane %v849_v49, 1  ;;  %v974_v52 = vmul.f32 0.03125, %v837_v50  ;;  %v993_v25 = vld [vmem:[#allocation2 + $0x8] sm:$0x1] }
 0x187   :  { %v1009_v40 = vunpack.c.l.bf16 %v993_v25 }
 0x188   :  { %v851_v53 = vadd.f32 %v850_v51, %v849_v49  ;;  %v976_v54 = vmul.f32 %v974_v52, %v974_v52 }
 0x18a   :  { %v975_v55 = vmul.f32 0.03125, %v851_v53 }
 0x18c   :  { %v977_v56 = vsub.f32 %v975_v55, %v976_v54 }
 0x18e   :  { %v978_v57 = vmax.f32 %v977_v56, 0.0 }
 0x190   :  { %v980_v58 = vadd.f32 1e-05, %v978_v57 }
 0x192   :  { %2549 = vrsqrt.f32 %v980_v58 }
 0x19c   :  { %v2550_v61 = vpop.eup %2549 }
 0x19d   :  { %v982_v62 = vmul.f32 %v2550_v61, %v979_v59 }
 0x19f   :  { %v984_v5 = vmul.f32 %v982_v62, %v974_v52  ;;  %v1022_v11 = vrot.slane %v982_v62, %v2815_v60 }
 0x1a1   :  { %v985_v16 = vsub.f32 %v983_v2, %v984_v5  ;;  %v1023_v21 = vcombine.high %v1022_v11, %v1022_v11  ;;  %v1030_v22 = vrot.slane %v1022_v11, %v2801_v46 }
 0x1a3   :  { %v1037_v32 = vrot.slane %v1023_v21, %v2801_v46  ;;  %v1038_v33 = vcombine.high %v1030_v22, %v1030_v22  ;;  %v1064_v37 = vrot.slane %v985_v16, %v2815_v60  ;;  %v1044_v43 = vmul.f32 %v1030_v22, %v1002_v13 }
 0x1a4   :  { %v1048_v44 = vmul.f32 %v1030_v22, %v1006_v34  ;;  %v1052_v45 = vmul.f32 %v1030_v22, %v1010_v14  ;;  %v1056_v47 = vmul.f32 %v1030_v22, %v1014_v29 }
 0x1a5   :  { %v1039_v42 = vcombine.high %v1037_v32, %v1037_v32  ;;  %v1045_v48 = vmul.f32 %v1038_v33, %v1003_v26  ;;  %v1046_v49 = vmul.f32 %v1037_v32, %v1004_v27  ;;  %v1049_v50 = vmul.f32 %v1038_v33, %v1007_v38 }
 0x1a6   :  { %v1050_v51 = vmul.f32 %v1037_v32, %v1008_v39  ;;  %v1053_v52 = vmul.f32 %v1038_v33, %v1011_v15  ;;  %v1054_v53 = vmul.f32 %v1037_v32, %v1012_v20  ;;  %v1065_v54 = vcombine.high %v1064_v37, %v1064_v37 }
 0x1a7   :  { %v1072_v55 = vrot.slane %v1064_v37, %v2801_v46  ;;  %v1047_v56 = vmul.f32 %v1039_v42, %v1005_v30  ;;  %v1051_v57 = vmul.f32 %v1039_v42, %v1009_v40  ;;  %v1055_v58 = vmul.f32 %v1039_v42, %v1013_v28 }
 0x1a8   :  { %v1057_v59 = vmul.f32 %v1038_v33, %v1015_v35  ;;  %v1079_v61 = vrot.slane %v1065_v54, %v2801_v46  ;;  %v1058_v1 = vmul.f32 %v1037_v32, %v1016_v31  ;;  %v1059_v2 = vmul.f32 %v1039_v42, %v1017_v36 }
 0x1a9   :  { %v1080_v62 = vcombine.high %v1072_v55, %v1072_v55  ;;  %v1086_v63 = vadd.f32 %v1072_v55, %v1044_v43  ;;  %v1090_v0 = vadd.f32 %v1072_v55, %v1048_v44  ;;  %v1094_v3 = vadd.f32 %v1072_v55, %v1052_v45 }
 0x1aa   :  { %v1098_v4 = vadd.f32 %v1072_v55, %v1056_v47  ;;  %v1081_v5 = vcombine.high %v1079_v61, %v1079_v61  ;;  %v1088_v8 = vadd.f32 %v1079_v61, %v1046_v49  ;;  %v1092_v11 = vadd.f32 %v1079_v61, %v1050_v51 }
 0x1ab   :  { %v1087_v7 = vadd.f32 %v1080_v62, %v1045_v48  ;;  %v1091_v10 = vadd.f32 %v1080_v62, %v1049_v50  ;;  %v1095_v12 = vadd.f32 %v1080_v62, %v1053_v52  ;;  %v1096_v6 = vadd.f32 %v1079_v61, %v1054_v53 }
 0x1ac   :  { %v1099_v13 = vadd.f32 %v1080_v62, %v1057_v59  ;;  %v1089_v14 = vadd.f32 %v1081_v5, %v1047_v56  ;;  %v1093_v15 = vadd.f32 %v1081_v5, %v1051_v57  ;;  %v1097_v16 = vadd.f32 %v1081_v5, %v1055_v58 }
 0x1ad   :  { %v1100_v17 = vadd.f32 %v1079_v61, %v1058_v1  ;;  %v1101_v18 = vadd.f32 %v1081_v5, %v1059_v2  ;;  %v1102_v19 = vmax.f32 %v1086_v63, 0.0  ;;  %v1103_v20 = vmax.f32 %v1087_v7, 0.0  ;;  %v1204_v2 = vld [vmem:[#allocation2] sm:$0x1] }
 0x1ae   :  { %v1104_v21 = vmax.f32 %v1088_v8, 0.0  ;;  %v1105_v22 = vmax.f32 %v1089_v14, 0.0  ;;  %v1106_v23 = vmax.f32 %v1090_v0, 0.0  ;;  %v1107_v24 = vmax.f32 %v1091_v10, 0.0 }
 0x1af   :  { %v1108_v25 = vmax.f32 %v1092_v11, 0.0  ;;  %v1109_v26 = vmax.f32 %v1093_v15, 0.0  ;;  %v1110_v27 = vmax.f32 %v1094_v3, 0.0  ;;  %v1111_v28 = vmax.f32 %v1095_v12, 0.0 }
 0x1b0   :  { %v1112_v29 = vmax.f32 %v1096_v6, 0.0  ;;  %v1113_v30 = vmax.f32 %v1097_v16, 0.0  ;;  %v1114_v31 = vmax.f32 %v1098_v4, 0.0  ;;  %v1115_v32 = vmax.f32 %v1099_v13, 0.0 }
 0x1b1   :  { %v1116_v33 = vmax.f32 %v1100_v17, 0.0  ;;  %v1117_v34 = vmax.f32 %v1101_v18, 0.0  ;;  %v1118_v35 = vpack.c.bf16 %v1102_v19, %v1102_v19  ;;  %v1119_v36 = vpack.c.bf16 %v1103_v20, %v1103_v20 }
 0x1b2   :  { %v1120_v37 = vpack.c.bf16 %v1104_v21, %v1104_v21  ;;  %v1121_v38 = vpack.c.bf16 %v1105_v22, %v1105_v22  ;;  %v1122_v39 = vpack.c.bf16 %v1106_v23, %v1106_v23  ;;  %v1123_v40 = vpack.c.bf16 %v1107_v24, %v1107_v24 }
 0x1b3   :  { %v1124_v42 = vpack.c.bf16 %v1108_v25, %v1108_v25  ;;  %v1125_v43 = vpack.c.bf16 %v1109_v26, %v1109_v26  ;;  %v1126_v44 = vpack.c.bf16 %v1110_v27, %v1110_v27  ;;  %v1127_v45 = vpack.c.bf16 %v1111_v28, %v1111_v28  ;;  %1134 = vst [vmem:[#allocation2 + $0x1] sm:$0x1] %v1118_v35 }
 0x1b4   :  { %v1128_v47 = vpack.c.bf16 %v1112_v29, %v1112_v29  ;;  %1135 = vst [vmem:[#allocation2 + $0x2] sm:$0x1] %v1119_v36  ;;  %1136 = vst [vmem:[#allocation2 + $0x3] sm:$0x1] %v1120_v37  ;;  %v1129_v48 = vpack.c.bf16 %v1113_v30, %v1113_v30  ;;  %v1130_v49 = vpack.c.bf16 %v1114_v31, %v1114_v31 }
 0x1b5   :  { %v1131_v50 = vpack.c.bf16 %v1115_v32, %v1115_v32  ;;  %v1132_v51 = vpack.c.bf16 %v1116_v33, %v1116_v33  ;;  %1138 = vst [vmem:[#allocation2 + $0x5] sm:$0x1] %v1122_v39  ;;  %1139 = vst [vmem:[#allocation2 + $0x6] sm:$0x1] %v1123_v40  ;;  %v1133_v52 = vpack.c.bf16 %v1117_v34, %v1117_v34 }
 0x1b6   :  { %1140 = vst [vmem:[#allocation2 + $0x7] sm:$0x1] %v1124_v42  ;;  %1137 = vst [vmem:[#allocation2 + $0x4] sm:$0x1] %v1121_v38 }
 0x1b7   :  { %1141 = vst [vmem:[#allocation2 + $0x8] sm:$0x1] %v1125_v43  ;;  %1142 = vst [vmem:[#allocation2 + $0x9] sm:$0x1] %v1126_v44 }
 0x1b8   :  { %1143 = vst [vmem:[#allocation2 + $0xa] sm:$0x1] %v1127_v45  ;;  %1144 = vst [vmem:[#allocation2 + $0xb] sm:$0x1] %v1128_v47 }
 0x1b9   :  { %1145 = vst [vmem:[#allocation2 + $0xc] sm:$0x1] %v1129_v48  ;;  %1146 = vst [vmem:[#allocation2 + $0xd] sm:$0x1] %v1130_v49 }
 0x1ba   :  { %1147 = vst [vmem:[#allocation2 + $0xe] sm:$0x1] %v1131_v50  ;;  %1148 = vst [vmem:[#allocation2 + $0xf] sm:$0x1] %v1132_v51  ;;  %v1220_v53 = vld [vmem:[#allocation2 + $0x1] sm:$0x1] }
 0x1bb   :  { %1149 = vst [vmem:[#allocation2 + $0x10] sm:$0x1] %v1133_v52  ;;  %v1221_v54 = vld [vmem:[#allocation2 + $0x2] sm:$0x1]  ;;  %v1222_v55 = vld [vmem:[#allocation2 + $0x3] sm:$0x1] }
 0x1bc   :  { %v1224_v57 = vld [vmem:[#allocation2 + $0x5] sm:$0x1]  ;;  %v1225_v58 = vld [vmem:[#allocation2 + $0x6] sm:$0x1]  ;;  %v1269_v59 = vcombine.low %v1220_v53, %v1221_v54  ;;  %v1205_v19 = vld [vmem:[#allocation2 + $0x1] sm:$0x1] }
 0x1bd   :  { %v1223_v56 = vld [vmem:[#allocation2 + $0x4] sm:$0x1]  ;;  %v1226_v61 = vld [vmem:[#allocation2 + $0x7] sm:$0x1]  ;;  %v1271_v0 = vcombine.low %v1224_v57, %v1225_v58  ;;  %v1206_v20 = vld [vmem:[#allocation2 + $0x2] sm:$0x1]  ;;  %v1482_v32 = vcombine.low %v1204_v2, %v1205_v19 }
 0x1be   :  { %v1227_v62 = vld [vmem:[#allocation2 + $0x8] sm:$0x1]  ;;  %v1270_v63 = vcombine.low %v1222_v55, %v1223_v56  ;;  %v1228_v1 = vld [vmem:[#allocation2 + $0x9] sm:$0x1]  ;;  %v1279_v8 = vrot.slane %v1269_v59, %v2756_v9  ;;  %v1207_v25 = vld [vmem:[#allocation2 + $0x3] sm:$0x1] }
 0x1bf   :  { %v1272_v3 = vcombine.low %v1226_v61, %v1227_v62  ;;  %v1229_v4 = vld [vmem:[#allocation2 + $0xa] sm:$0x1]  ;;  %v1230_v5 = vld [vmem:[#allocation2 + $0xb] sm:$0x1]  ;;  %v1293_v15 = vrot.slane %v1271_v0, %v2756_v9  ;;  %v1208_v26 = vld [vmem:[#allocation2 + $0x4] sm:$0x1]  ;;  %v1483_v33 = vcombine.low %v1206_v20, %v1207_v25  ;;  %v1492_v40 = vrot.slane %v1482_v32, %v2756_v9 }
 0x1c0   :  { %v1231_v7 = vld [vmem:[#allocation2 + $0xc] sm:$0x1]  ;;  %v1286_v10 = vrot.slane %v1270_v63, %v2756_v9  ;;  %v1232_v11 = vld [vmem:[#allocation2 + $0xd] sm:$0x1]  ;;  %v1318_v13 = vcombine.low %v1228_v1, %v1229_v4  ;;  %v1209_v29 = vld [vmem:[#allocation2 + $0x5] sm:$0x1] }
 0x1c1   :  { %v1233_v12 = vld [vmem:[#allocation2 + $0xe] sm:$0x1]  ;;  %v1234_v6 = vld [vmem:[#allocation2 + $0xf] sm:$0x1]  ;;  %v1319_v14 = vcombine.low %v1230_v5, %v1231_v7  ;;  %v1300_v16 = vrot.slane %v1272_v3, %v2756_v9  ;;  %v1210_v30 = vld [vmem:[#allocation2 + $0x6] sm:$0x1]  ;;  %v1484_v37 = vcombine.low %v1208_v26, %v1209_v29  ;;  %v1499_v42 = vrot.slane %v1483_v33, %v2756_v9 }
 0x1c2   :  { %v1235_v17 = vld [vmem:[#allocation2 + $0x10] sm:$0x1]  ;;  %v1320_v18 = vcombine.low %v1232_v11, %v1233_v12  ;;  %v1301_v21 = vcombine.low %v1279_v8, %v1286_v10  ;;  %v1328_v23 = vrot.slane %v1318_v13, %v2756_v9  ;;  %v1211_v31 = vld [vmem:[#allocation2 + $0x7] sm:$0x1]  ;;  %v2535_v57 = vld [vmem:[#allocation8 + $0x10] sm:$0xff]  }
 0x1c3   :  { %v1321_v22 = vcombine.low %v1234_v6, %v1235_v17  ;;  %v1335_v24 = vrot.slane %v1319_v14, %v2756_v9  ;;  %v1302_v27 = vcombine.low %v1293_v15, %v1300_v16  ;;  %v1485_v39 = vcombine.low %v1210_v30, %v1211_v31  ;;  %v2534_v53 = vld [vmem:[#allocation8 + $0x8] sm:$0xff]   ;;  %v2536_v58 = vld [vmem:[#allocation8 + $0x18] sm:$0xff]   ;;  %v2537_v59 = vld [vmem:[#allocation8 + $0x20] sm:$0xff]  }
 0x1c4   :  { %v1342_v28 = vrot.slane %v1320_v18, %v2756_v9  ;;  %v1309_v34 = vrot.slane %v1301_v21, %v2756_v9  ;;  %v1506_v45 = vrot.slane %v1484_v37, %v2756_v9  ;;  %v1514_v49 = vcombine.low %v1492_v40, %v1499_v42  ;;  %v1212_v61 = vld [vmem:[#allocation2 + $0x8] sm:$0x1]  ;;  %v1213_v62 = vld [vmem:[#allocation2 + $0x9] sm:$0x1]  ;;  %v1214_v63 = vld [vmem:[#allocation2 + $0xa] sm:$0x1] }
 0x1c5   :  { %v1349_v35 = vrot.slane %v1321_v22, %v2756_v9  ;;  %v1350_v36 = vcombine.low %v1328_v23, %v1335_v24  ;;  %v1316_v38 = vrot.slane %v1302_v27, %v2756_v9  ;;  %v1513_v48 = vrot.slane %v1485_v39, %v2756_v9  ;;  %v1215_v0 = vld [vmem:[#allocation2 + $0xb] sm:$0x1]  ;;  %v1216_v1 = vld [vmem:[#allocation2 + $0xc] sm:$0x1]  ;;  %v1217_v2 = vld [vmem:[#allocation2 + $0xd] sm:$0x1] }
 0x1c6   :  { %v1522_v54 = vrot.slane %v1514_v49, %v2756_v9  ;;  %v1218_v3 = vld [vmem:[#allocation2 + $0xe] sm:$0x1]  ;;  %v1219_v5 = vld [vmem:[#allocation2 + $0xf] sm:$0x1]  ;;  %v1243_v7 = vld [vmem:[#allocation2 + $0x8] sm:$0x1]  ;;  %v1531_v12 = vcombine.low %v1212_v61, %v1213_v62  ;;  %v1533_v6 = vcombine.low %v1216_v1, %v1217_v2  ;;  %v1532_v18 = vcombine.low %v1214_v63, %v1215_v0 }
 0x1c7   :  { %v1351_v43 = vcombine.low %v1342_v28, %v1349_v35  ;;  %v1358_v44 = vrot.slane %v1350_v36, %v2756_v9  ;;  %v1317_v47 = vcombine.low %v1309_v34, %v1316_v38  ;;  %v1515_v51 = vcombine.low %v1506_v45, %v1513_v48  ;;  %v2538_v4 = vld [vmem:[#allocation8 + $0x28] sm:$0xff]   ;;  %v1237_v8 = vld [vmem:[#allocation2 + $0x2] sm:$0x1]  ;;  %v1238_v10 = vld [vmem:[#allocation2 + $0x3] sm:$0x1] }
 0x1c8   :  { %v1240_v11 = vld [vmem:[#allocation2 + $0x5] sm:$0x1]  ;;  %v1241_v13 = vld [vmem:[#allocation2 + $0x6] sm:$0x1]  ;;  %v1242_v14 = vld [vmem:[#allocation2 + $0x7] sm:$0x1]  ;;  %v1534_v19 = vcombine.low %v1218_v3, %v1219_v5  ;;  %v1695_v20 = vcombine.low %v1237_v8, %v1238_v10  ;;  %v1541_v23 = vrot.slane %v1531_v12, %v2756_v9  ;;  %v1555_v24 = vrot.slane %v1533_v6, %v2756_v9 }
 0x1c9   :  { %v1365_v50 = vrot.slane %v1351_v43, %v2756_v9  ;;  %2430 = vmatprep.mubr.bf16.mxu1 %v1317_v47  ;;  %v1529_v55 = vrot.slane %v1515_v51, %v2756_v9  ;;  %v1244_v15 = vld [vmem:[#allocation2 + $0x9] sm:$0x1]  ;;  %v1697_v21 = vcombine.low %v1241_v13, %v1242_v14  ;;  %v2539_v22 = vld [vmem:[#allocation8 + $0x30] sm:$0xff]   ;;  %v1548_v27 = vrot.slane %v1532_v18, %v2756_v9  ;;  %v2540_v31 = vld [vmem:[#allocation8 + $0x38] sm:$0xff]  }
 0x1ca   :  { %v1698_v17 = vcombine.low %v1243_v7, %v1244_v15  ;;  %v1562_v28 = vrot.slane %v1534_v19, %v2756_v9  ;;  %v1705_v29 = vrot.slane %v1695_v20, %v2756_v9  ;;  %v2541_v38 = vld [vmem:[#allocation8 + $0x80] sm:$0xff]   ;;  %v2542_v43 = vld [vmem:[#allocation8 + $0x88] sm:$0xff]   ;;  %v2543_v45 = vld [vmem:[#allocation8 + $0x90] sm:$0xff]  }
 0x1cb   :  { %v1366_v52 = vcombine.low %v1358_v44, %v1365_v50  ;;  %v1530_v56 = vcombine.low %v1522_v54, %v1529_v55  ;;  %v1719_v30 = vrot.slane %v1697_v21, %v2756_v9  ;;  %v1563_v32 = vcombine.low %v1541_v23, %v1548_v27  ;;  %v2544_v47 = vld [vmem:[#allocation8 + $0x98] sm:$0xff]   ;;  %v2545_v48 = vld [vmem:[#allocation8 + $0xa0] sm:$0xff]   ;;  %v1247_v49 = vld [vmem:[#allocation2 + $0xc] sm:$0x1] }
 0x1cc   :  { %v1726_v26 = vrot.slane %v1698_v17, %v2756_v9  ;;  %v1564_v33 = vcombine.low %v1555_v24, %v1562_v28  ;;  %v1251_v50 = vld [vmem:[#allocation2 + $0x10] sm:$0x1]  ;;  %v1252_v51 = vld [vmem:[#allocation2 + $0x11] sm:$0x1]  ;;  %v1248_v54 = vld [vmem:[#allocation2 + $0xd] sm:$0x1] }
 0x1cd   :  { %2431 = vmatmul.mubr.bf16.vlgmr.msra.gmra.mrb[0].mxu1 %v1366_v52  ;;  %v1571_v36 = vrot.slane %v1563_v32, %v2756_v9  ;;  %v1245_v52 = vld [vmem:[#allocation2 + $0xa] sm:$0x1]  ;;  %v1249_v55 = vld [vmem:[#allocation2 + $0xe] sm:$0x1]  ;;  %v2547_v63 = vld [vmem:[#allocation8 + $0xb0] sm:$0xff]  }
 0x1ce   :  { %2435 = vmatpush3.bf16.msra.mxu1 %v2794_v41  ;;  %2450 = vmatprep.mubr.bf16.mxu1 %v1530_v56  ;;  %v1239_v41 = vld [vmem:[#allocation2 + $0x4] sm:$0x1]  ;;  %v1728_v35 = vcombine.low %v1719_v30, %v1726_v26  ;;  %v1578_v37 = vrot.slane %v1564_v33, %v2756_v9  ;;  %v1250_v56 = vld [vmem:[#allocation2 + $0xf] sm:$0x1] }
 0x1cf   :  { %2436 = vmatprep.subr.bf16.mxu1 %v2534_v53  ;;  %v1696_v16 = vcombine.low %v1239_v41, %v1240_v11  ;;  %v1746_v62 = vcombine.low %v1249_v55, %v1250_v56  ;;  %v2293_v11 = vld [vmem:[%s2907_s6] ss:$0 sm:$0xff] }
 0x1d0   :  { %v1742_v40 = vrot.slane %v1728_v35, %v2756_v9  ;;  %v1579_v42 = vcombine.low %v1571_v36, %v1578_v37 }
 0x1d1   :  { %v1712_v25 = vrot.slane %v1696_v16, %v2756_v9  ;;  %v1768_v3 = vrot.slane %v1746_v62, %v2756_v9 }
 0x1d2   :  { %2437 = vmatpush3.bf16.msra.mxu1 %v2534_v53  ;;  %v1246_v53 = vld [vmem:[#allocation2 + $0xb] sm:$0x1] }
 0x1d3   :  { %2438 = vmatprep.subr.bf16.mxu1 %v2535_v57  ;;  %v1727_v34 = vcombine.low %v1705_v29, %v1712_v25  ;;  %v1744_v61 = vcombine.low %v1245_v52, %v1246_v53 }
 0x1d5   :  { %v1735_v39 = vrot.slane %v1727_v34, %v2756_v9  ;;  %v1754_v2 = vrot.slane %v1744_v61, %v2756_v9 }
 0x1d6   :  { %2439 = vmatpush3.bf16.msra.mxu1 %v2535_v57  ;;  %v2546_v57 = vld [vmem:[#allocation8 + $0xa8] sm:$0xff]  }
 0x1d7   :  { %2440 = vmatprep.subr.bf16.mxu1 %v2536_v58  ;;  %v1743_v44 = vcombine.low %v1735_v39, %v1742_v40 }
 0x1da   :  { %2441 = vmatpush3.bf16.msra.mxu1 %v2536_v58  ;;  %v1745_v58 = vcombine.low %v1247_v49, %v1248_v54 }
 0x1db   :  { %2442 = vmatprep.subr.bf16.mxu1 %v2537_v59 }
 0x1dc   :  { %v1761_v0 = vrot.slane %v1745_v58, %v2756_v9 }
 0x1de   :  { %2443 = vmatpush3.bf16.msra.mxu1 %v2537_v59  ;;  %v1747_v59 = vcombine.low %v1251_v50, %v1252_v51  ;;  %v1776_v5 = vcombine.low %v1754_v2, %v1761_v0 }
 0x1df   :  { %2444 = vmatprep.subr.bf16.mxu1 %v2538_v4 }
 0x1e0   :  { %v1775_v1 = vrot.slane %v1747_v59, %v2756_v9  ;;  %v1784_v7 = vrot.slane %v1776_v5, %v2756_v9 }
 0x1e2   :  { %2445 = vmatpush3.bf16.msra.mxu1 %v2538_v4  ;;  %v2548_v4 = vld [vmem:[#allocation8 + $0xb8] sm:$0xff]   ;;  %v1777_v41 = vcombine.low %v1768_v3, %v1775_v1 }
 0x1e3   :  { %2446 = vmatprep.subr.bf16.mxu1 %v2539_v22 }
 0x1e4   :  { %v1791_v8 = vrot.slane %v1777_v41, %v2756_v9 }
 0x1e6   :  { %2447 = vmatpush3.bf16.msra.mxu1 %v2539_v22  ;;  %v1792_v10 = vcombine.low %v1784_v7, %v1791_v8 }
 0x1e7   :  { %2448 = vmatprep.subr.bf16.mxu1 %v2540_v31 }
 0x1ea   :  { %2449 = vmatpush3.bf16.msra.mxu1 %v2540_v31 }
 0x1eb   :  { %2454 = vmatprep.subr.bf16.mxu1 %v2541_v38 }
 0x1ed   :  { %2451 = vmatmul.mubr.bf16.vlgmr.msra.gmra.mrb[0].mxu1 %v1579_v42 }
 0x1ee   :  { %2455 = vmatpush3.bf16.msra.mxu1 %v2541_v38  ;;  %2470 = vmatprep.mubr.bf16.mxu1 %v1743_v44 }
 0x1ef   :  { %2456 = vmatprep.subr.bf16.mxu1 %v2542_v43 }
 0x1f2   :  { %2457 = vmatpush3.bf16.msra.mxu1 %v2542_v43 }
 0x1f3   :  { %2458 = vmatprep.subr.bf16.mxu1 %v2543_v45 }
 0x1f6   :  { %2459 = vmatpush3.bf16.msra.mxu1 %v2543_v45 }
 0x1f7   :  { %2460 = vmatprep.subr.bf16.mxu1 %v2544_v47 }
 0x1fa   :  { %2461 = vmatpush3.bf16.msra.mxu1 %v2544_v47 }
 0x1fb   :  { %2462 = vmatprep.subr.bf16.mxu1 %v2545_v48 }
 0x1fe   :  { %2463 = vmatpush3.bf16.msra.mxu1 %v2545_v48 }
 0x1ff   :  { %2464 = vmatprep.subr.bf16.mxu1 %v2546_v57 }
 0x202   :  { %2465 = vmatpush3.bf16.msra.mxu1 %v2546_v57 }
 0x203   :  { %2466 = vmatprep.subr.bf16.mxu1 %v2547_v63 }
 0x206   :  { %2467 = vmatpush3.bf16.msra.mxu1 %v2547_v63 }
 0x207   :  { %2468 = vmatprep.subr.bf16.mxu1 %v2548_v4 }
 0x20a   :  { %2469 = vmatpush3.bf16.msra.mxu1 %v2548_v4 }
 0x20d   :  { %2471 = vmatmul.mubr.bf16.vlgmr.msra.gmra.mrb[0].mxu1 %v1792_v10 }
 0x2e0   :  { %v2472_v12 = vpop.f32.mrb[0].mxu1 }
 0x2e1   :  { %v1904_v6 = vadd.f32 %v2472_v12, %v2293_v11  ;;  %v1877_v13 = vpop.f32.mrb[1].mxu1 }
 0x2e2   :  { %v1902_v14 = vadd.f32 %v2293_v11, %v1877_v13  ;;  %v2473_v15 = vpop.f32.mrb[2].mxu1 }
 0x2e3   :  { %v1968_v16 = vcombine.high %v1904_v6, %v1904_v6  ;;  %v1975_v17 = vrot.slane %v1904_v6, %v2801_v46  ;;  %v1905_v18 = vadd.f32 %v2473_v15, %v2293_v11  ;;  %v1880_v19 = vpop.f32.mrb[3].mxu1  ;;  %v1918_v52 = vmul.f32 %v1904_v6, %v1904_v6 }
 0x2e4   :  { %v1916_v20 = vmul.f32 %v1902_v14, %v1902_v14  ;;  %v1934_v21 = vcombine.high %v1902_v14, %v1902_v14  ;;  %v1941_v9 = vrot.slane %v1902_v14, %v2801_v46  ;;  %v1903_v25 = vadd.f32 %v2293_v11, %v1880_v19 }
 0x2e5   :  { %v1982_v22 = vrot.slane %v1968_v16, %v2801_v46  ;;  %v1983_v23 = vcombine.high %v1975_v17, %v1975_v17  ;;  %v2026_v24 = vpack.c.bf16 %v1975_v17, %v1975_v17  ;;  %v1985_v29 = vcombine.high %v1905_v18, %v1905_v18 }
 0x2e6   :  { %v1948_v26 = vrot.slane %v1934_v21, %v2801_v46  ;;  %v1949_v27 = vcombine.high %v1941_v9, %v1941_v9  ;;  %v2018_v28 = vpack.c.bf16 %v1941_v9, %v1941_v9  ;;  %v1992_v33 = vrot.slane %v1905_v18, %v2801_v46  ;;  %v2055_v21 = vld [vmem:[%s2908_s7] sm:$0x1]  ;;  %s2657_s7 = smov [#allocation9]  }
 0x2e7   :  { %v1984_v30 = vcombine.high %v1982_v22, %v1982_v22  ;;  %v2027_v31 = vpack.c.bf16 %v1983_v23, %v1983_v23  ;;  %v2028_v32 = vpack.c.bf16 %v1982_v22, %v1982_v22  ;;  %2042 = vst [vmem:[#allocation9 + $0x8] sm:$0x1] %v2026_v24  ;;  %v1999_v37 = vrot.slane %v1985_v29, %v2801_v46 }
 0x2e8   :  { %v1950_v34 = vcombine.high %v1948_v26, %v1948_v26  ;;  %v2019_v35 = vpack.c.bf16 %v1949_v27, %v1949_v27  ;;  %v2020_v36 = vpack.c.bf16 %v1948_v26, %v1948_v26  ;;  %2034 = vst [vmem:[#allocation9] sm:$0x1] %v2018_v28  ;;  %v2000_v39 = vcombine.high %v1992_v33, %v1992_v33  ;;  %v2059_v26 = vld [vmem:[%s2909_s8] sm:$0x1]  ;;  %s2231_s8 = sshll.u32 %s2657_s7, 4  ;;  %s2232_s8 = int_to_ptr.vmem [resolvable:$true] %s2231_s8 }
 0x2e9   :  { %v2029_v38 = vpack.c.bf16 %v1984_v30, %v1984_v30  ;;  %2043 = vst [vmem:[#allocation9 + $0x9] sm:$0x1] %v2027_v31  ;;  %2044 = vst [vmem:[#allocation9 + $0xa] sm:$0x1] %v2028_v32  ;;  %v2030_v40 = vpack.c.bf16 %v1992_v33, %v1992_v33  ;;  %v1906_v42 = vadd.f32 %v1903_v25, %v1902_v14  ;;  %s2619_s13 = scalar_lea.vmem %s2232_s8, 256  ;;  %p2624_p11 = scmp.lt.s32.totalorder %s2232_s8, %s2232_s8 }
 0x2ea   :  { %v2021_v43 = vpack.c.bf16 %v1950_v34, %v1950_v34  ;;  %2035 = vst [vmem:[#allocation9 + $0x1] sm:$0x1] %v2019_v35  ;;  %2036 = vst [vmem:[#allocation9 + $0x2] sm:$0x1] %v2020_v36  ;;  %v2001_v44 = vcombine.high %v1999_v37, %v1999_v37  ;;  %v2032_v45 = vpack.c.bf16 %v1999_v37, %v1999_v37  ;;  %p2620_p10 = scmp.ne.s32.totalorder %s2232_s8, %s2619_s13  ;;  %p2625_p12 = scmp.lt.s32.totalorder %s2619_s13, %s2619_s13 }
 0x2eb   :  { %v1917_v47 = vmul.f32 %v1903_v25, %v1903_v25  ;;  %2045 = vst [vmem:[#allocation9 + $0xb] sm:$0x1] %v2029_v38  ;;  %v2031_v48 = vpack.c.bf16 %v2000_v39, %v2000_v39  ;;  %2046 = vst [vmem:[#allocation9 + $0xc] sm:$0x1] %v2030_v40  ;;  %v1907_v49 = vadd.f32 %v1906_v42, %v1904_v6 }
 0x2ec   :  { %v1951_v50 = vcombine.high %v1903_v25, %v1903_v25  ;;  %v1958_v51 = vrot.slane %v1903_v25, %v2801_v46  ;;  %2037 = vst [vmem:[#allocation9 + $0x3] sm:$0x1] %v2021_v43  ;;  %v2033_v53 = vpack.c.bf16 %v2001_v44, %v2001_v44  ;;  %2048 = vst [vmem:[#allocation9 + $0xe] sm:$0x1] %v2032_v45  ;;  %p2626_p13 = por %p2625_p12, %p2624_p11 }
 0x2ed   :  { %v1920_v54 = vadd.f32 %v1917_v47, %v1916_v20  ;;  %2047 = vst [vmem:[#allocation9 + $0xd] sm:$0x1] %v2031_v48  ;;  %v1908_v55 = vadd.f32 %v1907_v49, %v1905_v18  ;;  %v1919_v59 = vmul.f32 %v1905_v18, %v1905_v18 }
 0x2ee   :  { %v1965_v56 = vrot.slane %v1951_v50, %v2801_v46  ;;  %v1966_v57 = vcombine.high %v1958_v51, %v1958_v51  ;;  %v2022_v58 = vpack.c.bf16 %v1958_v51, %v1958_v51  ;;  %2049 = vst [vmem:[#allocation9 + $0xf] sm:$0x1] %v2033_v53  ;;  %v2070_v24 = vld [vmem:[#allocation9 + $0x8] sm:$0x1]  ;;  %p2627_p0 = pnand %p2626_p13, %p2620_p10 }
 0x2ef   :  { %v1921_v61 = vadd.f32 %v1920_v54, %v1918_v52  ;;  %v1909_v62 = vrot.slane %v1908_v55, 4  ;;  %v2062_v23 = vld [vmem:[#allocation9] sm:$0x1]  ;;  %v2086_v37 = vunpack.c.l.bf16 %v2070_v24 }
 0x2f0   :  { %v1967_v63 = vcombine.high %v1965_v56, %v1965_v56  ;;  %v2023_v0 = vpack.c.bf16 %v1966_v57, %v1966_v57  ;;  %v2024_v1 = vpack.c.bf16 %v1965_v56, %v1965_v56  ;;  %2038 = vst [vmem:[#allocation9 + $0x4] sm:$0x1] %v2022_v58  ;;  %v2071_v25 = vld [vmem:[#allocation9 + $0x9] sm:$0x1]  ;;  %v2072_v28 = vld [vmem:[#allocation9 + $0xa] sm:$0x1]  ;;  %v2078_v36 = vunpack.c.l.bf16 %v2062_v23 }
 0x2f1   :  { %v1922_v2 = vadd.f32 %v1921_v61, %v1919_v59  ;;  %v1910_v3 = vadd.f32 %v1909_v62, %v1908_v55  ;;  %v2063_v27 = vld [vmem:[#allocation9 + $0x1] sm:$0x1]  ;;  %v2064_v30 = vld [vmem:[#allocation9 + $0x2] sm:$0x1]  ;;  %v2087_v38 = vunpack.c.l.bf16 %v2071_v25  ;;  %v2088_v44 = vunpack.c.l.bf16 %v2072_v28 }
 0x2f2   :  { %v2025_v4 = vpack.c.bf16 %v1967_v63, %v1967_v63  ;;  %2039 = vst [vmem:[#allocation9 + $0x5] sm:$0x1] %v2023_v0  ;;  %2040 = vst [vmem:[#allocation9 + $0x6] sm:$0x1] %v2024_v1  ;;  %v2073_v31 = vld [vmem:[#allocation9 + $0xb] sm:$0x1]  ;;  %v2079_v51 = vunpack.c.l.bf16 %v2063_v27  ;;  %v2080_v52 = vunpack.c.l.bf16 %v2064_v30 }
 0x2f3   :  { %v1923_v5 = vrot.slane %v1922_v2, 4  ;;  %v1911_v41 = vrot.slane %v1910_v3, 2  ;;  %v2074_v32 = vld [vmem:[#allocation9 + $0xc] sm:$0x1]  ;;  %v2065_v34 = vld [vmem:[#allocation9 + $0x3] sm:$0x1]  ;;  %v2089_v53 = vunpack.c.l.bf16 %v2073_v31 }
 0x2f4   :  { %2041 = vst [vmem:[#allocation9 + $0x7] sm:$0x1] %v2025_v4  ;;  %v2076_v35 = vld [vmem:[#allocation9 + $0xe] sm:$0x1]  ;;  %v2075_v42 = vld [vmem:[#allocation9 + $0xd] sm:$0x1]  ;;  %v2090_v54 = vunpack.c.l.bf16 %v2074_v32  ;;  %v2081_v55 = vunpack.c.l.bf16 %v2065_v34 }
 0x2f5   :  { %v1924_v7 = vadd.f32 %v1923_v5, %v1922_v2  ;;  %v1912_v8 = vadd.f32 %v1911_v41, %v1910_v3  ;;  %v2077_v43 = vld [vmem:[#allocation9 + $0xf] sm:$0x1]  ;;  %v2092_v56 = vunpack.c.l.bf16 %v2076_v35  ;;  %v2091_v61 = vunpack.c.l.bf16 %v2075_v42 }
 0x2f6   :  { %v2093_v62 = vunpack.c.l.bf16 %v2077_v43 }
 0x2f7   :  { %v1925_v10 = vrot.slane %v1924_v7, 2  ;;  %v1913_v11 = vrot.slane %v1912_v8, 1  ;;  %v2066_v40 = vld [vmem:[#allocation9 + $0x4] sm:$0x1] }
 0x2f8   :  { %v2082_v59 = vunpack.c.l.bf16 %v2066_v40 }
 0x2f9   :  { %v1926_v12 = vadd.f32 %v1925_v10, %v1924_v7  ;;  %v1914_v6 = vadd.f32 %v1913_v11, %v1912_v8  ;;  %v2067_v48 = vld [vmem:[#allocation9 + $0x5] sm:$0x1]  ;;  %v2068_v49 = vld [vmem:[#allocation9 + $0x6] sm:$0x1] }
 0x2fa   :  { %v2083_v0 = vunpack.c.l.bf16 %v2067_v48  ;;  %v2084_v1 = vunpack.c.l.bf16 %v2068_v49 }
 0x2fb   :  { %v1927_v13 = vrot.slane %v1926_v12, 1  ;;  %v2050_v14 = vmul.f32 0.03125, %v1914_v6  ;;  %v2069_v50 = vld [vmem:[#allocation9 + $0x7] sm:$0x1] }
 0x2fc   :  { %v2085_v2 = vunpack.c.l.bf16 %v2069_v50 }
 0x2fd   :  { %v1928_v15 = vadd.f32 %v1927_v13, %v1926_v12  ;;  %v2052_v16 = vmul.f32 %v2050_v14, %v2050_v14 }
 0x2ff   :  { %v2051_v17 = vmul.f32 0.03125, %v1928_v15 }
 0x301   :  { %v2053_v18 = vsub.f32 %v2051_v17, %v2052_v16 }
 0x303   :  { %v2054_v19 = vmax.f32 %v2053_v18, 0.0 }
 0x305   :  { %v2056_v20 = vadd.f32 1e-05, %v2054_v19 }
 0x307   :  { %2551 = vrsqrt.f32 %v2056_v20 }
 0x311   :  { %v2552_v9 = vpop.eup %2551 }
 0x312   :  { %v2058_v22 = vmul.f32 %v2552_v9, %v2055_v21 }
 0x314   :  { %v2060_v29 = vmul.f32 %v2058_v22, %v2050_v14  ;;  %v2098_v33 = vrot.slane %v2058_v22, %v2815_v60 }
 0x316   :  { %v2061_v39 = vsub.f32 %v2059_v26, %v2060_v29  ;;  %v2099_v45 = vcombine.high %v2098_v33, %v2098_v33  ;;  %v2106_v47 = vrot.slane %v2098_v33, %v2801_v46 }
 0x318   :  { %v2113_v57 = vrot.slane %v2099_v45, %v2801_v46  ;;  %v2114_v58 = vcombine.high %v2106_v47, %v2106_v47  ;;  %v2140_v63 = vrot.slane %v2061_v39, %v2815_v60  ;;  %v2120_v4 = vmul.f32 %v2106_v47, %v2078_v36 }
 0x319   :  { %v2124_v5 = vmul.f32 %v2106_v47, %v2082_v59  ;;  %v2128_v41 = vmul.f32 %v2106_v47, %v2086_v37  ;;  %v2132_v7 = vmul.f32 %v2106_v47, %v2090_v54 }
 0x31a   :  { %v2115_v3 = vcombine.high %v2113_v57, %v2113_v57  ;;  %v2121_v8 = vmul.f32 %v2114_v58, %v2079_v51  ;;  %v2122_v10 = vmul.f32 %v2113_v57, %v2080_v52  ;;  %v2125_v11 = vmul.f32 %v2114_v58, %v2083_v0 }
 0x31b   :  { %v2126_v12 = vmul.f32 %v2113_v57, %v2084_v1  ;;  %v2129_v6 = vmul.f32 %v2114_v58, %v2087_v38  ;;  %v2130_v13 = vmul.f32 %v2113_v57, %v2088_v44  ;;  %v2141_v14 = vcombine.high %v2140_v63, %v2140_v63 }
 0x31c   :  { %v2148_v15 = vrot.slane %v2140_v63, %v2801_v46  ;;  %v2123_v16 = vmul.f32 %v2115_v3, %v2081_v55  ;;  %v2127_v17 = vmul.f32 %v2115_v3, %v2085_v2  ;;  %v2131_v60 = vmul.f32 %v2115_v3, %v2089_v53 }
 0x31d   :  { %v2133_v18 = vmul.f32 %v2114_v58, %v2091_v61  ;;  %v2155_v19 = vrot.slane %v2141_v14, %v2801_v46  ;;  %v2134_v22 = vmul.f32 %v2113_v57, %v2092_v56  ;;  %v2135_v23 = vmul.f32 %v2115_v3, %v2093_v62 }
 0x31e   :  { %v2156_v20 = vcombine.high %v2148_v15, %v2148_v15  ;;  %v2162_v21 = vadd.f32 %v2148_v15, %v2120_v4  ;;  %v2166_v9 = vadd.f32 %v2148_v15, %v2124_v5  ;;  %v2170_v24 = vadd.f32 %v2148_v15, %v2128_v41 }
 0x31f   :  { %v2174_v25 = vadd.f32 %v2148_v15, %v2132_v7  ;;  %v2157_v26 = vcombine.high %v2155_v19, %v2155_v19  ;;  %v2164_v28 = vadd.f32 %v2155_v19, %v2122_v10  ;;  %v2168_v30 = vadd.f32 %v2155_v19, %v2126_v12 }
 0x320   :  { %v2163_v27 = vadd.f32 %v2156_v20, %v2121_v8  ;;  %v2167_v29 = vadd.f32 %v2156_v20, %v2125_v11  ;;  %v2171_v31 = vadd.f32 %v2156_v20, %v2129_v6  ;;  %v2172_v32 = vadd.f32 %v2155_v19, %v2130_v13 }
 0x321   :  { %v2175_v33 = vadd.f32 %v2156_v20, %v2133_v18  ;;  %v2165_v34 = vadd.f32 %v2157_v26, %v2123_v16  ;;  %v2169_v35 = vadd.f32 %v2157_v26, %v2127_v17  ;;  %v2173_v36 = vadd.f32 %v2157_v26, %v2131_v60 }
 0x322   :  { %v2176_v37 = vadd.f32 %v2155_v19, %v2134_v22  ;;  %v2177_v46 = vadd.f32 %v2157_v26, %v2135_v23  ;;  %v2178_v38 = vmax.f32 %v2162_v21, 0.0  ;;  %v2179_v39 = vmax.f32 %v2163_v27, 0.0 }
 0x323   :  { %v2180_v40 = vmax.f32 %v2164_v28, 0.0  ;;  %v2181_v42 = vmax.f32 %v2165_v34, 0.0  ;;  %v2182_v43 = vmax.f32 %v2166_v9, 0.0  ;;  %v2183_v44 = vmax.f32 %v2167_v29, 0.0 }
 0x324   :  { %v2184_v45 = vmax.f32 %v2168_v30, 0.0  ;;  %v2185_v47 = vmax.f32 %v2169_v35, 0.0  ;;  %v2186_v48 = vmax.f32 %v2170_v24, 0.0  ;;  %v2187_v49 = vmax.f32 %v2171_v31, 0.0 }
 0x325   :  { %v2188_v50 = vmax.f32 %v2172_v32, 0.0  ;;  %v2189_v51 = vmax.f32 %v2173_v36, 0.0  ;;  %v2190_v52 = vmax.f32 %v2174_v25, 0.0  ;;  %v2191_v53 = vmax.f32 %v2175_v33, 0.0 }
 0x326   :  { %v2192_v54 = vmax.f32 %v2176_v37, 0.0  ;;  %v2193_v55 = vmax.f32 %v2177_v46, 0.0  ;;  %v2194_v56 = vpack.c.bf16 %v2178_v38, %v2178_v38  ;;  %v2195_v57 = vpack.c.bf16 %v2179_v39, %v2179_v39 }
 0x327   :  { %v2196_v58 = vpack.c.bf16 %v2180_v40, %v2180_v40  ;;  %v2197_v59 = vpack.c.bf16 %v2181_v42, %v2181_v42  ;;  %v2198_v61 = vpack.c.bf16 %v2182_v43, %v2182_v43  ;;  %v2199_v62 = vpack.c.bf16 %v2183_v44, %v2183_v44 }
 0x328   :  { %v2200_v63 = vpack.c.bf16 %v2184_v45, %v2184_v45  ;;  %v2201_v0 = vpack.c.bf16 %v2185_v47, %v2185_v47  ;;  %v2202_v1 = vpack.c.bf16 %v2186_v48, %v2186_v48  ;;  %v2203_v2 = vpack.c.bf16 %v2187_v49, %v2187_v49  ;;  %2210 = vst [vmem:[#allocation9] sm:$0x1] %v2194_v56 }
 0x329   :  { %v2204_v3 = vpack.c.bf16 %v2188_v50, %v2188_v50  ;;  %2211 = vst [vmem:[#allocation9 + $0x1] sm:$0x1] %v2195_v57  ;;  %2212 = vst [vmem:[#allocation9 + $0x2] sm:$0x1] %v2196_v58  ;;  %v2205_v4 = vpack.c.bf16 %v2189_v51, %v2189_v51  ;;  %v2206_v5 = vpack.c.bf16 %v2190_v52, %v2190_v52 }
 0x32a   :  { %v2207_v41 = vpack.c.bf16 %v2191_v53, %v2191_v53  ;;  %v2208_v7 = vpack.c.bf16 %v2192_v54, %v2192_v54  ;;  %2213 = vst [vmem:[#allocation9 + $0x3] sm:$0x1] %v2197_v59  ;;  %2214 = vst [vmem:[#allocation9 + $0x4] sm:$0x1] %v2198_v61  ;;  %v2209_v8 = vpack.c.bf16 %v2193_v55, %v2193_v55 }
 0x32b   :  { %2215 = vst [vmem:[#allocation9 + $0x5] sm:$0x1] %v2199_v62  ;;  %2216 = vst [vmem:[#allocation9 + $0x6] sm:$0x1] %v2200_v63 }
 0x32c   :  { %2217 = vst [vmem:[#allocation9 + $0x7] sm:$0x1] %v2201_v0  ;;  %2218 = vst [vmem:[#allocation9 + $0x8] sm:$0x1] %v2202_v1 }
 0x32d   :  { %2219 = vst [vmem:[#allocation9 + $0x9] sm:$0x1] %v2203_v2  ;;  %2220 = vst [vmem:[#allocation9 + $0xa] sm:$0x1] %v2204_v3 }
 0x32e   :  { %2221 = vst [vmem:[#allocation9 + $0xb] sm:$0x1] %v2205_v4  ;;  %2222 = vst [vmem:[#allocation9 + $0xc] sm:$0x1] %v2206_v5 }
 0x32f   :  { %2223 = vst [vmem:[#allocation9 + $0xd] sm:$0x1] %v2207_v41  ;;  %2224 = vst [vmem:[#allocation9 + $0xe] sm:$0x1] %v2208_v7 }
 0x330   :  { %2225 = vst [vmem:[#allocation9 + $0xf] sm:$0x1] %v2209_v8 }
 0x331   :  { %2630 = shalt.err (!%p2627_p0)
}
 0x332   :  { %s2631_s16 = scalar_lea.hbm %s2910_s9, 256 }
 0x333   :  { %p2632_p1 = scmp.ne.s32.totalorder %s2910_s9, %s2631_s16  ;;  %p2635_p2 = scmp.lt.u32.totalorder %s2631_s16, %s2910_s9 }
 0x335   :  { %p2637_p3 = pnand %p2635_p2, %p2632_p1 }
 0x337   :  { %2640 = shalt.err (!%p2637_p3)
}
 0x338   :  { %2237 = dma.vmem_to_hbm [thread:$0]  %s2232_s8, 256, %s2910_s9, [#allocation5], %s2651_s1, %s2651_s1, %s2652_s10  }
 0x339   :  { %2645 = dma.done.wait [#allocation5], 256  }
 0x33a   :  { %2646 = vsyncadd [#allocation5], 4294967040 }
 0x33b   :  { %2241 = vsyncpa [#allocation4], 1 }
 0x33c   :  { %2242 = vsyncpa [#allocation7], 1 }
 0x33d   :  { %2243 = vsyncpa [#allocation5], 1 }

</bundles_post_ra>
